<compile_context>
chip_gen: v5e
topology: v5e:2x2
jax: 0.10.0
libtpu: 0.0.40
codegen_flags: <defaults>
</compile_context>

<pallas_src>
import jax
import jax.numpy as jnp
from jax.experimental import pallas as pl
from jax.experimental.pallas import tpu as pltpu


def _conv3x3_kernel(x_ref, w_ref, b_ref, o_ref, xpad_ref, xflat_ref):
    # x_ref:     (NB, Cin, H, W)          NCHW input tile (NB images per grid step)
    # w_ref:     (9, Cout, Cin)           per-tap weights, t = kh*3 + kw
    # b_ref:     (Cout, 1)                bias
    # o_ref:     (NB, Cout, H*W)          lane-dense, NCHW-ordered output tile
    # xpad_ref:  (Cin, H+2, W+2)          scratch: reflection-padded image (2-D form)
    # xflat_ref: (Cin, G + NB*Npad + G)   scratch: flat padded image(s) + guard bands
    NB, Cin, H, W = x_ref.shape
    Cout = w_ref.shape[1]
    Hp, Wp = H + 2, W + 2
    Npad = Hp * Wp          # padded pixels per image (flattened onto the lane axis)
    Ntot = NB * Npad
    G = Wp + 1              # guard band >= max |tap shift| = Wp + 1

    # Deterministic guard bands.  Guard (and cross-image) reads only ever feed the
    # padded-border outputs, which are discarded below.
    xflat_ref[:, 0:G] = jnp.zeros((Cin, G), jnp.float32)
    xflat_ref[:, G + Ntot:G + Ntot + G] = jnp.zeros((Cin, G), jnp.float32)

    for b in range(NB):
        x = x_ref[b].astype(jnp.float32)                       # (Cin, H, W)

        # Reflection pad (pad=1), matching nn.ReflectionPad2d(1).  All 9 stores are
        # sourced directly from x (independent; no RAW chain through xpad_ref), and
        # channels sit on the leading axis so nothing is a narrow lane-masked store
        # against a 128-lane-padded channel axis.
        xpad_ref[:, 1:H + 1, 1:W + 1] = x
        xpad_ref[:, 0:1, 1:W + 1] = x[:, 1:2, :]               # row -1 -> row 1
        xpad_ref[:, H + 1:H + 2, 1:W + 1] = x[:, H - 2:H - 1, :]  # row H -> row H-2
        xpad_ref[:, 1:H + 1, 0:1] = x[:, :, 1:2]               # col -1 -> col 1
        xpad_ref[:, 1:H + 1, W + 1:W + 2] = x[:, :, W - 2:W - 1]  # col W -> col W-2
        xpad_ref[:, 0:1, 0:1] = x[:, 1:2, 1:2]                 # corners
        xpad_ref[:, 0:1, W + 1:W + 2] = x[:, 1:2, W - 2:W - 1]
        xpad_ref[:, H + 1:H + 2, 0:1] = x[:, H - 2:H - 1, 1:2]
        xpad_ref[:, H + 1:H + 2, W + 1:W + 2] = x[:, H - 2:H - 1, W - 2:W - 1]

        # Flatten padded rows onto the lane axis: xflat[:, G + b*Npad + r*Wp + c]
        # == xpad[:, r, c].  Row-wise copies avoid any sublane<->lane reshape.
        base = G + b * Npad
        for r in range(Hp):
            xflat_ref[:, base + r * Wp:base + (r + 1) * Wp] = xpad_ref[:, r, :]

    # 9 accumulated MXU matmuls over constant-shift windows of the flat padded
    # image(s).  Each tap is a plain static lane-slice (guard band keeps it in
    # bounds); K = Cin per dot — with 9*Cin << 128 the MXU contraction is equally
    # underfilled either way, so skipping im2col removes the 9x write+re-read of
    # the input through VMEM (perf review).  Border outputs are garbage by
    # construction and discarded in the extraction below.
    acc = jnp.zeros((Cout, Ntot), dtype=jnp.float32)
    for kh in range(3):
        for kw in range(3):
            t = kh * 3 + kw
            s = (kh - 1) * Wp + (kw - 1)                       # tap shift, flat space
            slab = xflat_ref[:, G + s:G + s + Ntot]            # (Cin, Ntot)
            acc = acc + jax.lax.dot_general(
                w_ref[t], slab,
                dimension_numbers=(((1,), (0,)), ((), ())),
                preferred_element_type=jnp.float32)
    acc = acc + b_ref[...]                                     # (Cout, 1) broadcast

    # Extract the valid interior pixels into the lane-dense (Cout, H*W) output.
    # (H small W-wide stores at the very end; the HBM writeback of the output
    #  block itself is fully dense since H*W is a multiple of 128 here.)
    for b in range(NB):
        for h in range(H):
            src = b * Npad + (h + 1) * Wp + 1
            o_ref[b, :, h * W:(h + 1) * W] = acc[:, src:src + W].astype(o_ref.dtype)


def _default_vmem_limit_bytes():
    # Derive the scoped-VMEM limit from the chip (64 MiB/TC on v7x, 128 MiB on
    # v5e/v6e) instead of hardcoding; fall back if the query is unavailable.
    try:
        info = pltpu.get_tpu_info()
        cap = int(getattr(info, "vmem_capacity_bytes", 128 * 1024 * 1024))
    except Exception:
        cap = 128 * 1024 * 1024
    return min(cap // 2, 64 * 1024 * 1024)


def conv3x3_pallas(x_nchw, weight_oihw, bias, *, stride=1, images_per_step=None):
    """Forward pass of the PyTorch `conv3x3` module (stride=1 default).

    x_nchw:      (N, Cin, H, W)     float32
    weight_oihw: (Cout, Cin, 3, 3)  float32  (nn.Conv2d weight layout)
    bias:        (Cout,)            float32
    returns:     (N, Cout, H, W)    float32
    """
    assert stride == 1, "only the module-default stride=1 path is implemented"
    N, Cin, H, W = x_nchw.shape
    Cout = weight_oihw.shape[0]
    assert weight_oihw.shape == (Cout, Cin, 3, 3)
    assert H >= 2 and W >= 2, "reflection pad of 1 needs spatial dims >= 2"

    # Images per grid step: amortize the ~0.35us fixed per-step cost, but keep
    # >= 2 grid steps so both v7x TensorCores (megacore) get work.
    if images_per_step is None:
        images_per_step = 1
        for nb in range(min(N // 2, 8), 1, -1):
            if N % nb == 0:
                images_per_step = nb
                break
    NB = max(1, int(images_per_step))
    assert N % NB == 0, "images_per_step must divide the batch size"

    # Per-tap weights: OIHW -> (9, Cout, Cin), t = kh*3 + kw.
    w9 = jnp.transpose(weight_oihw, (2, 3, 0, 1)).reshape(9, Cout, Cin)
    b2d = bias.reshape(Cout, 1)

    Npad = (H + 2) * (W + 2)
    G = (W + 2) + 1

    out = pl.pallas_call(
        _conv3x3_kernel,
        out_shape=jax.ShapeDtypeStruct((N, Cout, H * W), x_nchw.dtype),
        grid_spec=pltpu.PrefetchScalarGridSpec(
            num_scalar_prefetch=0,
            grid=(N // NB,),
            in_specs=[
                pl.BlockSpec((NB, Cin, H, W), lambda n: (n, 0, 0, 0)),   # NCHW direct
                pl.BlockSpec((9, Cout, Cin), lambda n: (0, 0, 0)),       # resident
                pl.BlockSpec((Cout, 1), lambda n: (0, 0)),               # resident
            ],
            out_specs=pl.BlockSpec((NB, Cout, H * W), lambda n: (n, 0, 0)),
            scratch_shapes=[
                pltpu.VMEM((Cin, H + 2, W + 2), jnp.float32),
                pltpu.VMEM((Cin, G + NB * Npad + G), jnp.float32),
            ],
        ),
        compiler_params=pltpu.CompilerParams(
            dimension_semantics=("parallel",),
            vmem_limit_bytes=_default_vmem_limit_bytes(),
        ),
    )(x_nchw, w9, b2d)

    # (N, Cout, H*W) -> (N, Cout, H, W): already NCHW-ordered, free trailing reshape.
    return out.reshape(N, Cout, H, W)


def _reference_conv3x3(x_nchw, weight_oihw, bias):
    """Pure-JAX reference (reflection pad + conv) for validation."""
    x_pad = jnp.pad(x_nchw, ((0, 0), (0, 0), (1, 1), (1, 1)), mode="reflect")
    out = jax.lax.conv_general_dilated(
        x_pad, weight_oihw,
        window_strides=(1, 1), padding="VALID",
        dimension_numbers=("NCHW", "OIHW", "NCHW"),
    )
    return out + bias[None, :, None, None]


if __name__ == "__main__":
    # Module config: conv3x3(in_planes=4, out_planes=8)
    N, Cin, H, W = 2, 4, 16, 16
    Cout = 8

    key = jax.random.PRNGKey(0)
    kx, kwt, kb = jax.random.split(key, 3)

    x = jax.random.normal(kx, (N, Cin, H, W), dtype=jnp.float32)
    weight = jax.random.normal(kwt, (Cout, Cin, 3, 3), dtype=jnp.float32) * 0.1
    bias = jax.random.normal(kb, (Cout,), dtype=jnp.float32) * 0.1

    fn = jax.jit(conv3x3_pallas)
    out = jax.block_until_ready(fn(x, weight, bias))
    ref = jax.block_until_ready(_reference_conv3x3(x, weight, bias))

    assert out.shape == (N, Cout, H, W)
    err = float(jnp.max(jnp.abs(out - ref)))
    assert jnp.allclose(out, ref, atol=1e-4, rtol=1e-4), f"max abs err {err}"

    print("KERNEL_OK")
</pallas_src>

<mosaic_0001>
module attributes {stable_mosaic.version = 11 : i64} {
  func.func @_conv3x3_kernel(%arg0: i32, %arg1: memref<1x4x16x16xf32, #tpu.memory_space<vmem>>, %arg2: memref<9x8x4xf32, #tpu.memory_space<vmem>>, %arg3: memref<8x1xf32, #tpu.memory_space<vmem>>, %arg4: memref<1x8x256xf32, #tpu.memory_space<vmem>>, %arg5: memref<4x18x18xf32, #tpu.memory_space<vmem>>, %arg6: memref<4x362xf32, #tpu.memory_space<vmem>>) attributes {dimension_semantics = [#tpu.dimension_semantics<parallel>], iteration_bounds = array<i64: 2>, scalar_prefetch = 0 : i64, scratch_operands = 2 : i64, tpu.core_type = #tpu.core_type<tc>, window_params = [{transform_indices = @transform_0, window_bounds = array<i64: 1, 4, 16, 16>}, {pipeline_mode = #tpu.pipeline_mode<synchronous>, transform_indices = @transform_1, window_bounds = array<i64: 9, 8, 4>}, {pipeline_mode = #tpu.pipeline_mode<synchronous>, transform_indices = @transform_2, window_bounds = array<i64: 8, 1>}, {transform_indices = @transform_3, window_bounds = array<i64: 1, 8, 256>}]} {
    %cst = arith.constant 0.000000e+00 : f32
    %0 = vector.broadcast %cst : f32 to vector<4x19xf32>
    %c0 = arith.constant 0 : index
    %c0_0 = arith.constant 0 : index
    %1 = vector.load %arg6[%c0, %c0_0] : memref<4x362xf32, #tpu.memory_space<vmem>>, vector<4x19xf32>
    tpu.vector_store %arg6[%c0, %c0_0], %0 {strides = array<i32>} : memref<4x362xf32, #tpu.memory_space<vmem>>, vector<4x19xf32>,
    %cst_1 = arith.constant 0.000000e+00 : f32
    %2 = vector.broadcast %cst_1 : f32 to vector<4x19xf32>
    %c0_2 = arith.constant 0 : index
    %c343 = arith.constant 343 : index
    %3 = vector.load %arg6[%c0_2, %c343] : memref<4x362xf32, #tpu.memory_space<vmem>>, vector<4x19xf32>
    tpu.vector_store %arg6[%c0_2, %c343], %2 {strides = array<i32>} : memref<4x362xf32, #tpu.memory_space<vmem>>, vector<4x19xf32>,
    %c0_3 = arith.constant 0 : index
    %c0_4 = arith.constant 0 : index
    %c0_5 = arith.constant 0 : index
    %c0_6 = arith.constant 0 : index
    %4 = vector.load %arg1[%c0_3, %c0_4, %c0_5, %c0_6] : memref<1x4x16x16xf32, #tpu.memory_space<vmem>>, vector<1x4x16x16xf32>
    %5 = vector.shape_cast %4 : vector<1x4x16x16xf32> to vector<4x16x16xf32>
    %c0_7 = arith.constant 0 : index
    %c1 = arith.constant 1 : index
    %c1_8 = arith.constant 1 : index
    %6 = vector.load %arg5[%c0_7, %c1, %c1_8] : memref<4x18x18xf32, #tpu.memory_space<vmem>>, vector<4x16x16xf32>
    tpu.vector_store %arg5[%c0_7, %c1, %c1_8], %5 {strides = array<i32>} : memref<4x18x18xf32, #tpu.memory_space<vmem>>, vector<4x16x16xf32>,
    %7 = vector.extract_strided_slice %5 {offsets = [0, 1, 0], sizes = [4, 1, 16], strides = [1, 1, 1]} : vector<4x16x16xf32> to vector<4x1x16xf32>
    %c0_9 = arith.constant 0 : index
    %c0_10 = arith.constant 0 : index
    %c1_11 = arith.constant 1 : index
    %8 = vector.load %arg5[%c0_9, %c0_10, %c1_11] : memref<4x18x18xf32, #tpu.memory_space<vmem>>, vector<4x1x16xf32>
    tpu.vector_store %arg5[%c0_9, %c0_10, %c1_11], %7 {strides = array<i32>} : memref<4x18x18xf32, #tpu.memory_space<vmem>>, vector<4x1x16xf32>,
    %9 = vector.extract_strided_slice %5 {offsets = [0, 14, 0], sizes = [4, 1, 16], strides = [1, 1, 1]} : vector<4x16x16xf32> to vector<4x1x16xf32>
    %c0_12 = arith.constant 0 : index
    %c17 = arith.constant 17 : index
    %c1_13 = arith.constant 1 : index
    %10 = vector.load %arg5[%c0_12, %c17, %c1_13] : memref<4x18x18xf32, #tpu.memory_space<vmem>>, vector<4x1x16xf32>
    tpu.vector_store %arg5[%c0_12, %c17, %c1_13], %9 {strides = array<i32>} : memref<4x18x18xf32, #tpu.memory_space<vmem>>, vector<4x1x16xf32>,
    %11 = vector.extract_strided_slice %5 {offsets = [0, 0, 1], sizes = [4, 16, 1], strides = [1, 1, 1]} : vector<4x16x16xf32> to vector<4x16x1xf32>
    %c0_14 = arith.constant 0 : index
    %c1_15 = arith.constant 1 : index
    %c0_16 = arith.constant 0 : index
    %12 = vector.load %arg5[%c0_14, %c1_15, %c0_16] : memref<4x18x18xf32, #tpu.memory_space<vmem>>, vector<4x16x1xf32>
    tpu.vector_store %arg5[%c0_14, %c1_15, %c0_16], %11 {strides = array<i32>} : memref<4x18x18xf32, #tpu.memory_space<vmem>>, vector<4x16x1xf32>,
    %13 = vector.extract_strided_slice %5 {offsets = [0, 0, 14], sizes = [4, 16, 1], strides = [1, 1, 1]} : vector<4x16x16xf32> to vector<4x16x1xf32>
    %c0_17 = arith.constant 0 : index
    %c1_18 = arith.constant 1 : index
    %c17_19 = arith.constant 17 : index
    %14 = vector.load %arg5[%c0_17, %c1_18, %c17_19] : memref<4x18x18xf32, #tpu.memory_space<vmem>>, vector<4x16x1xf32>
    tpu.vector_store %arg5[%c0_17, %c1_18, %c17_19], %13 {strides = array<i32>} : memref<4x18x18xf32, #tpu.memory_space<vmem>>, vector<4x16x1xf32>,
    %15 = vector.extract_strided_slice %5 {offsets = [0, 1, 1], sizes = [4, 1, 1], strides = [1, 1, 1]} : vector<4x16x16xf32> to vector<4x1x1xf32>
    %c0_20 = arith.constant 0 : index
    %c0_21 = arith.constant 0 : index
    %c0_22 = arith.constant 0 : index
    %16 = vector.load %arg5[%c0_20, %c0_21, %c0_22] : memref<4x18x18xf32, #tpu.memory_space<vmem>>, vector<4x1x1xf32>
    tpu.vector_store %arg5[%c0_20, %c0_21, %c0_22], %15 {strides = array<i32>} : memref<4x18x18xf32, #tpu.memory_space<vmem>>, vector<4x1x1xf32>,
    %17 = vector.extract_strided_slice %5 {offsets = [0, 1, 14], sizes = [4, 1, 1], strides = [1, 1, 1]} : vector<4x16x16xf32> to vector<4x1x1xf32>
    %c0_23 = arith.constant 0 : index
    %c0_24 = arith.constant 0 : index
    %c17_25 = arith.constant 17 : index
    %18 = vector.load %arg5[%c0_23, %c0_24, %c17_25] : memref<4x18x18xf32, #tpu.memory_space<vmem>>, vector<4x1x1xf32>
    tpu.vector_store %arg5[%c0_23, %c0_24, %c17_25], %17 {strides = array<i32>} : memref<4x18x18xf32, #tpu.memory_space<vmem>>, vector<4x1x1xf32>,
    %19 = vector.extract_strided_slice %5 {offsets = [0, 14, 1], sizes = [4, 1, 1], strides = [1, 1, 1]} : vector<4x16x16xf32> to vector<4x1x1xf32>
    %c0_26 = arith.constant 0 : index
    %c17_27 = arith.constant 17 : index
    %c0_28 = arith.constant 0 : index
    %20 = vector.load %arg5[%c0_26, %c17_27, %c0_28] : memref<4x18x18xf32, #tpu.memory_space<vmem>>, vector<4x1x1xf32>
    tpu.vector_store %arg5[%c0_26, %c17_27, %c0_28], %19 {strides = array<i32>} : memref<4x18x18xf32, #tpu.memory_space<vmem>>, vector<4x1x1xf32>,
    %21 = vector.extract_strided_slice %5 {offsets = [0, 14, 14], sizes = [4, 1, 1], strides = [1, 1, 1]} : vector<4x16x16xf32> to vector<4x1x1xf32>
    %c0_29 = arith.constant 0 : index
    %c17_30 = arith.constant 17 : index
    %c17_31 = arith.constant 17 : index
    %22 = vector.load %arg5[%c0_29, %c17_30, %c17_31] : memref<4x18x18xf32, #tpu.memory_space<vmem>>, vector<4x1x1xf32>
    tpu.vector_store %arg5[%c0_29, %c17_30, %c17_31], %21 {strides = array<i32>} : memref<4x18x18xf32, #tpu.memory_space<vmem>>, vector<4x1x1xf32>,
    %c0_32 = arith.constant 0 : index
    %c0_33 = arith.constant 0 : index
    %c0_34 = arith.constant 0 : index
    %23 = vector.load %arg5[%c0_32, %c0_33, %c0_34] : memref<4x18x18xf32, #tpu.memory_space<vmem>>, vector<4x1x18xf32>
    %24 = vector.shape_cast %23 : vector<4x1x18xf32> to vector<4x18xf32>
    %c0_35 = arith.constant 0 : index
    %c19 = arith.constant 19 : index
    %25 = vector.load %arg6[%c0_35, %c19] : memref<4x362xf32, #tpu.memory_space<vmem>>, vector<4x18xf32>
    tpu.vector_store %arg6[%c0_35, %c19], %24 {strides = array<i32>} : memref<4x362xf32, #tpu.memory_space<vmem>>, vector<4x18xf32>,
    %c0_36 = arith.constant 0 : index
    %c1_37 = arith.constant 1 : index
    %c0_38 = arith.constant 0 : index
    %26 = vector.load %arg5[%c0_36, %c1_37, %c0_38] : memref<4x18x18xf32, #tpu.memory_space<vmem>>, vector<4x1x18xf32>
    %27 = vector.shape_cast %26 : vector<4x1x18xf32> to vector<4x18xf32>
    %c0_39 = arith.constant 0 : index
    %c37 = arith.constant 37 : index
    %28 = vector.load %arg6[%c0_39, %c37] : memref<4x362xf32, #tpu.memory_space<vmem>>, vector<4x18xf32>
    tpu.vector_store %arg6[%c0_39, %c37], %27 {strides = array<i32>} : memref<4x362xf32, #tpu.memory_space<vmem>>, vector<4x18xf32>,
    %c0_40 = arith.constant 0 : index
    %c2 = arith.constant 2 : index
    %c0_41 = arith.constant 0 : index
    %29 = vector.load %arg5[%c0_40, %c2, %c0_41] : memref<4x18x18xf32, #tpu.memory_space<vmem>>, vector<4x1x18xf32>
    %30 = vector.shape_cast %29 : vector<4x1x18xf32> to vector<4x18xf32>
    %c0_42 = arith.constant 0 : index
    %c55 = arith.constant 55 : index
    %31 = vector.load %arg6[%c0_42, %c55] : memref<4x362xf32, #tpu.memory_space<vmem>>, vector<4x18xf32>
    tpu.vector_store %arg6[%c0_42, %c55], %30 {strides = array<i32>} : memref<4x362xf32, #tpu.memory_space<vmem>>, vector<4x18xf32>,
    %c0_43 = arith.constant 0 : index
    %c3 = arith.constant 3 : index
    %c0_44 = arith.constant 0 : index
    %32 = vector.load %arg5[%c0_43, %c3, %c0_44] : memref<4x18x18xf32, #tpu.memory_space<vmem>>, vector<4x1x18xf32>
    %33 = vector.shape_cast %32 : vector<4x1x18xf32> to vector<4x18xf32>
    %c0_45 = arith.constant 0 : index
    %c73 = arith.constant 73 : index
    %34 = vector.load %arg6[%c0_45, %c73] : memref<4x362xf32, #tpu.memory_space<vmem>>, vector<4x18xf32>
    tpu.vector_store %arg6[%c0_45, %c73], %33 {strides = array<i32>} : memref<4x362xf32, #tpu.memory_space<vmem>>, vector<4x18xf32>,
    %c0_46 = arith.constant 0 : index
    %c4 = arith.constant 4 : index
    %c0_47 = arith.constant 0 : index
    %35 = vector.load %arg5[%c0_46, %c4, %c0_47] : memref<4x18x18xf32, #tpu.memory_space<vmem>>, vector<4x1x18xf32>
    %36 = vector.shape_cast %35 : vector<4x1x18xf32> to vector<4x18xf32>
    %c0_48 = arith.constant 0 : index
    %c91 = arith.constant 91 : index
    %37 = vector.load %arg6[%c0_48, %c91] : memref<4x362xf32, #tpu.memory_space<vmem>>, vector<4x18xf32>
    tpu.vector_store %arg6[%c0_48, %c91], %36 {strides = array<i32>} : memref<4x362xf32, #tpu.memory_space<vmem>>, vector<4x18xf32>,
    %c0_49 = arith.constant 0 : index
    %c5 = arith.constant 5 : index
    %c0_50 = arith.constant 0 : index
    %38 = vector.load %arg5[%c0_49, %c5, %c0_50] : memref<4x18x18xf32, #tpu.memory_space<vmem>>, vector<4x1x18xf32>
    %39 = vector.shape_cast %38 : vector<4x1x18xf32> to vector<4x18xf32>
    %c0_51 = arith.constant 0 : index
    %c109 = arith.constant 109 : index
    %40 = vector.load %arg6[%c0_51, %c109] : memref<4x362xf32, #tpu.memory_space<vmem>>, vector<4x18xf32>
    tpu.vector_store %arg6[%c0_51, %c109], %39 {strides = array<i32>} : memref<4x362xf32, #tpu.memory_space<vmem>>, vector<4x18xf32>,
    %c0_52 = arith.constant 0 : index
    %c6 = arith.constant 6 : index
    %c0_53 = arith.constant 0 : index
    %41 = vector.load %arg5[%c0_52, %c6, %c0_53] : memref<4x18x18xf32, #tpu.memory_space<vmem>>, vector<4x1x18xf32>
    %42 = vector.shape_cast %41 : vector<4x1x18xf32> to vector<4x18xf32>
    %c0_54 = arith.constant 0 : index
    %c127 = arith.constant 127 : index
    %43 = vector.load %arg6[%c0_54, %c127] : memref<4x362xf32, #tpu.memory_space<vmem>>, vector<4x18xf32>
    tpu.vector_store %arg6[%c0_54, %c127], %42 {strides = array<i32>} : memref<4x362xf32, #tpu.memory_space<vmem>>, vector<4x18xf32>,
    %c0_55 = arith.constant 0 : index
    %c7 = arith.constant 7 : index
    %c0_56 = arith.constant 0 : index
    %44 = vector.load %arg5[%c0_55, %c7, %c0_56] : memref<4x18x18xf32, #tpu.memory_space<vmem>>, vector<4x1x18xf32>
    %45 = vector.shape_cast %44 : vector<4x1x18xf32> to vector<4x18xf32>
    %c0_57 = arith.constant 0 : index
    %c145 = arith.constant 145 : index
    %46 = vector.load %arg6[%c0_57, %c145] : memref<4x362xf32, #tpu.memory_space<vmem>>, vector<4x18xf32>
    tpu.vector_store %arg6[%c0_57, %c145], %45 {strides = array<i32>} : memref<4x362xf32, #tpu.memory_space<vmem>>, vector<4x18xf32>,
    %c0_58 = arith.constant 0 : index
    %c8 = arith.constant 8 : index
    %c0_59 = arith.constant 0 : index
    %47 = vector.load %arg5[%c0_58, %c8, %c0_59] : memref<4x18x18xf32, #tpu.memory_space<vmem>>, vector<4x1x18xf32>
    %48 = vector.shape_cast %47 : vector<4x1x18xf32> to vector<4x18xf32>
    %c0_60 = arith.constant 0 : index
    %c163 = arith.constant 163 : index
    %49 = vector.load %arg6[%c0_60, %c163] : memref<4x362xf32, #tpu.memory_space<vmem>>, vector<4x18xf32>
    tpu.vector_store %arg6[%c0_60, %c163], %48 {strides = array<i32>} : memref<4x362xf32, #tpu.memory_space<vmem>>, vector<4x18xf32>,
    %c0_61 = arith.constant 0 : index
    %c9 = arith.constant 9 : index
    %c0_62 = arith.constant 0 : index
    %50 = vector.load %arg5[%c0_61, %c9, %c0_62] : memref<4x18x18xf32, #tpu.memory_space<vmem>>, vector<4x1x18xf32>
    %51 = vector.shape_cast %50 : vector<4x1x18xf32> to vector<4x18xf32>
    %c0_63 = arith.constant 0 : index
    %c181 = arith.constant 181 : index
    %52 = vector.load %arg6[%c0_63, %c181] : memref<4x362xf32, #tpu.memory_space<vmem>>, vector<4x18xf32>
    tpu.vector_store %arg6[%c0_63, %c181], %51 {strides = array<i32>} : memref<4x362xf32, #tpu.memory_space<vmem>>, vector<4x18xf32>,
    %c0_64 = arith.constant 0 : index
    %c10 = arith.constant 10 : index
    %c0_65 = arith.constant 0 : index
    %53 = vector.load %arg5[%c0_64, %c10, %c0_65] : memref<4x18x18xf32, #tpu.memory_space<vmem>>, vector<4x1x18xf32>
    %54 = vector.shape_cast %53 : vector<4x1x18xf32> to vector<4x18xf32>
    %c0_66 = arith.constant 0 : index
    %c199 = arith.constant 199 : index
    %55 = vector.load %arg6[%c0_66, %c199] : memref<4x362xf32, #tpu.memory_space<vmem>>, vector<4x18xf32>
    tpu.vector_store %arg6[%c0_66, %c199], %54 {strides = array<i32>} : memref<4x362xf32, #tpu.memory_space<vmem>>, vector<4x18xf32>,
    %c0_67 = arith.constant 0 : index
    %c11 = arith.constant 11 : index
    %c0_68 = arith.constant 0 : index
    %56 = vector.load %arg5[%c0_67, %c11, %c0_68] : memref<4x18x18xf32, #tpu.memory_space<vmem>>, vector<4x1x18xf32>
    %57 = vector.shape_cast %56 : vector<4x1x18xf32> to vector<4x18xf32>
    %c0_69 = arith.constant 0 : index
    %c217 = arith.constant 217 : index
    %58 = vector.load %arg6[%c0_69, %c217] : memref<4x362xf32, #tpu.memory_space<vmem>>, vector<4x18xf32>
    tpu.vector_store %arg6[%c0_69, %c217], %57 {strides = array<i32>} : memref<4x362xf32, #tpu.memory_space<vmem>>, vector<4x18xf32>,
    %c0_70 = arith.constant 0 : index
    %c12 = arith.constant 12 : index
    %c0_71 = arith.constant 0 : index
    %59 = vector.load %arg5[%c0_70, %c12, %c0_71] : memref<4x18x18xf32, #tpu.memory_space<vmem>>, vector<4x1x18xf32>
    %60 = vector.shape_cast %59 : vector<4x1x18xf32> to vector<4x18xf32>
    %c0_72 = arith.constant 0 : index
    %c235 = arith.constant 235 : index
    %61 = vector.load %arg6[%c0_72, %c235] : memref<4x362xf32, #tpu.memory_space<vmem>>, vector<4x18xf32>
    tpu.vector_store %arg6[%c0_72, %c235], %60 {strides = array<i32>} : memref<4x362xf32, #tpu.memory_space<vmem>>, vector<4x18xf32>,
    %c0_73 = arith.constant 0 : index
    %c13 = arith.constant 13 : index
    %c0_74 = arith.constant 0 : index
    %62 = vector.load %arg5[%c0_73, %c13, %c0_74] : memref<4x18x18xf32, #tpu.memory_space<vmem>>, vector<4x1x18xf32>
    %63 = vector.shape_cast %62 : vector<4x1x18xf32> to vector<4x18xf32>
    %c0_75 = arith.constant 0 : index
    %c253 = arith.constant 253 : index
    %64 = vector.load %arg6[%c0_75, %c253] : memref<4x362xf32, #tpu.memory_space<vmem>>, vector<4x18xf32>
    tpu.vector_store %arg6[%c0_75, %c253], %63 {strides = array<i32>} : memref<4x362xf32, #tpu.memory_space<vmem>>, vector<4x18xf32>,
    %c0_76 = arith.constant 0 : index
    %c14 = arith.constant 14 : index
    %c0_77 = arith.constant 0 : index
    %65 = vector.load %arg5[%c0_76, %c14, %c0_77] : memref<4x18x18xf32, #tpu.memory_space<vmem>>, vector<4x1x18xf32>
    %66 = vector.shape_cast %65 : vector<4x1x18xf32> to vector<4x18xf32>
    %c0_78 = arith.constant 0 : index
    %c271 = arith.constant 271 : index
    %67 = vector.load %arg6[%c0_78, %c271] : memref<4x362xf32, #tpu.memory_space<vmem>>, vector<4x18xf32>
    tpu.vector_store %arg6[%c0_78, %c271], %66 {strides = array<i32>} : memref<4x362xf32, #tpu.memory_space<vmem>>, vector<4x18xf32>,
    %c0_79 = arith.constant 0 : index
    %c15 = arith.constant 15 : index
    %c0_80 = arith.constant 0 : index
    %68 = vector.load %arg5[%c0_79, %c15, %c0_80] : memref<4x18x18xf32, #tpu.memory_space<vmem>>, vector<4x1x18xf32>
    %69 = vector.shape_cast %68 : vector<4x1x18xf32> to vector<4x18xf32>
    %c0_81 = arith.constant 0 : index
    %c289 = arith.constant 289 : index
    %70 = vector.load %arg6[%c0_81, %c289] : memref<4x362xf32, #tpu.memory_space<vmem>>, vector<4x18xf32>
    tpu.vector_store %arg6[%c0_81, %c289], %69 {strides = array<i32>} : memref<4x362xf32, #tpu.memory_space<vmem>>, vector<4x18xf32>,
    %c0_82 = arith.constant 0 : index
    %c16 = arith.constant 16 : index
    %c0_83 = arith.constant 0 : index
    %71 = vector.load %arg5[%c0_82, %c16, %c0_83] : memref<4x18x18xf32, #tpu.memory_space<vmem>>, vector<4x1x18xf32>
    %72 = vector.shape_cast %71 : vector<4x1x18xf32> to vector<4x18xf32>
    %c0_84 = arith.constant 0 : index
    %c307 = arith.constant 307 : index
    %73 = vector.load %arg6[%c0_84, %c307] : memref<4x362xf32, #tpu.memory_space<vmem>>, vector<4x18xf32>
    tpu.vector_store %arg6[%c0_84, %c307], %72 {strides = array<i32>} : memref<4x362xf32, #tpu.memory_space<vmem>>, vector<4x18xf32>,
    %c0_85 = arith.constant 0 : index
    %c17_86 = arith.constant 17 : index
    %c0_87 = arith.constant 0 : index
    %74 = vector.load %arg5[%c0_85, %c17_86, %c0_87] : memref<4x18x18xf32, #tpu.memory_space<vmem>>, vector<4x1x18xf32>
    %75 = vector.shape_cast %74 : vector<4x1x18xf32> to vector<4x18xf32>
    %c0_88 = arith.constant 0 : index
    %c325 = arith.constant 325 : index
    %76 = vector.load %arg6[%c0_88, %c325] : memref<4x362xf32, #tpu.memory_space<vmem>>, vector<4x18xf32>
    tpu.vector_store %arg6[%c0_88, %c325], %75 {strides = array<i32>} : memref<4x362xf32, #tpu.memory_space<vmem>>, vector<4x18xf32>,
    %cst_89 = arith.constant 0.000000e+00 : f32
    %77 = vector.broadcast %cst_89 : f32 to vector<8x324xf32>
    %c0_90 = arith.constant 0 : index
    %c0_91 = arith.constant 0 : index
    %78 = vector.load %arg6[%c0_90, %c0_91] : memref<4x362xf32, #tpu.memory_space<vmem>>, vector<4x324xf32>
    %c0_92 = arith.constant 0 : index
    %c0_93 = arith.constant 0 : index
    %c0_94 = arith.constant 0 : index
    %79 = vector.load %arg2[%c0_92, %c0_93, %c0_94] : memref<9x8x4xf32, #tpu.memory_space<vmem>>, vector<1x8x4xf32>
    %80 = vector.shape_cast %79 : vector<1x8x4xf32> to vector<8x4xf32>
    %cst_95 = arith.constant dense<0.000000e+00> : vector<8x324xf32>
    %81 = tpu.matmul %80, %78, %cst_95 {dimension_numbers = #tpu.dot_dimension_numbers<[1], [0], [0], [1], [0, 0, 1, 1], [], []>} : vector<8x4xf32>, vector<4x324xf32>, vector<8x324xf32> -> vector<8x324xf32>
    %82 = arith.addf %77, %81 : vector<8x324xf32>
    %c0_96 = arith.constant 0 : index
    %c1_97 = arith.constant 1 : index
    %83 = vector.load %arg6[%c0_96, %c1_97] : memref<4x362xf32, #tpu.memory_space<vmem>>, vector<4x324xf32>
    %c1_98 = arith.constant 1 : index
    %c0_99 = arith.constant 0 : index
    %c0_100 = arith.constant 0 : index
    %84 = vector.load %arg2[%c1_98, %c0_99, %c0_100] : memref<9x8x4xf32, #tpu.memory_space<vmem>>, vector<1x8x4xf32>
    %85 = vector.shape_cast %84 : vector<1x8x4xf32> to vector<8x4xf32>
    %cst_101 = arith.constant dense<0.000000e+00> : vector<8x324xf32>
    %86 = tpu.matmul %85, %83, %cst_101 {dimension_numbers = #tpu.dot_dimension_numbers<[1], [0], [0], [1], [0, 0, 1, 1], [], []>} : vector<8x4xf32>, vector<4x324xf32>, vector<8x324xf32> -> vector<8x324xf32>
    %87 = arith.addf %82, %86 : vector<8x324xf32>
    %c0_102 = arith.constant 0 : index
    %c2_103 = arith.constant 2 : index
    %88 = vector.load %arg6[%c0_102, %c2_103] : memref<4x362xf32, #tpu.memory_space<vmem>>, vector<4x324xf32>
    %c2_104 = arith.constant 2 : index
    %c0_105 = arith.constant 0 : index
    %c0_106 = arith.constant 0 : index
    %89 = vector.load %arg2[%c2_104, %c0_105, %c0_106] : memref<9x8x4xf32, #tpu.memory_space<vmem>>, vector<1x8x4xf32>
    %90 = vector.shape_cast %89 : vector<1x8x4xf32> to vector<8x4xf32>
    %cst_107 = arith.constant dense<0.000000e+00> : vector<8x324xf32>
    %91 = tpu.matmul %90, %88, %cst_107 {dimension_numbers = #tpu.dot_dimension_numbers<[1], [0], [0], [1], [0, 0, 1, 1], [], []>} : vector<8x4xf32>, vector<4x324xf32>, vector<8x324xf32> -> vector<8x324xf32>
    %92 = arith.addf %87, %91 : vector<8x324xf32>
    %c0_108 = arith.constant 0 : index
    %c18 = arith.constant 18 : index
    %93 = vector.load %arg6[%c0_108, %c18] : memref<4x362xf32, #tpu.memory_space<vmem>>, vector<4x324xf32>
    %c3_109 = arith.constant 3 : index
    %c0_110 = arith.constant 0 : index
    %c0_111 = arith.constant 0 : index
    %94 = vector.load %arg2[%c3_109, %c0_110, %c0_111] : memref<9x8x4xf32, #tpu.memory_space<vmem>>, vector<1x8x4xf32>
    %95 = vector.shape_cast %94 : vector<1x8x4xf32> to vector<8x4xf32>
    %cst_112 = arith.constant dense<0.000000e+00> : vector<8x324xf32>
    %96 = tpu.matmul %95, %93, %cst_112 {dimension_numbers = #tpu.dot_dimension_numbers<[1], [0], [0], [1], [0, 0, 1, 1], [], []>} : vector<8x4xf32>, vector<4x324xf32>, vector<8x324xf32> -> vector<8x324xf32>
    %97 = arith.addf %92, %96 : vector<8x324xf32>
    %c0_113 = arith.constant 0 : index
    %c19_114 = arith.constant 19 : index
    %98 = vector.load %arg6[%c0_113, %c19_114] : memref<4x362xf32, #tpu.memory_space<vmem>>, vector<4x324xf32>
    %c4_115 = arith.constant 4 : index
    %c0_116 = arith.constant 0 : index
    %c0_117 = arith.constant 0 : index
    %99 = vector.load %arg2[%c4_115, %c0_116, %c0_117] : memref<9x8x4xf32, #tpu.memory_space<vmem>>, vector<1x8x4xf32>
    %100 = vector.shape_cast %99 : vector<1x8x4xf32> to vector<8x4xf32>
    %cst_118 = arith.constant dense<0.000000e+00> : vector<8x324xf32>
    %101 = tpu.matmul %100, %98, %cst_118 {dimension_numbers = #tpu.dot_dimension_numbers<[1], [0], [0], [1], [0, 0, 1, 1], [], []>} : vector<8x4xf32>, vector<4x324xf32>, vector<8x324xf32> -> vector<8x324xf32>
    %102 = arith.addf %97, %101 : vector<8x324xf32>
    %c0_119 = arith.constant 0 : index
    %c20 = arith.constant 20 : index
    %103 = vector.load %arg6[%c0_119, %c20] : memref<4x362xf32, #tpu.memory_space<vmem>>, vector<4x324xf32>
    %c5_120 = arith.constant 5 : index
    %c0_121 = arith.constant 0 : index
    %c0_122 = arith.constant 0 : index
    %104 = vector.load %arg2[%c5_120, %c0_121, %c0_122] : memref<9x8x4xf32, #tpu.memory_space<vmem>>, vector<1x8x4xf32>
    %105 = vector.shape_cast %104 : vector<1x8x4xf32> to vector<8x4xf32>
    %cst_123 = arith.constant dense<0.000000e+00> : vector<8x324xf32>
    %106 = tpu.matmul %105, %103, %cst_123 {dimension_numbers = #tpu.dot_dimension_numbers<[1], [0], [0], [1], [0, 0, 1, 1], [], []>} : vector<8x4xf32>, vector<4x324xf32>, vector<8x324xf32> -> vector<8x324xf32>
    %107 = arith.addf %102, %106 : vector<8x324xf32>
    %c0_124 = arith.constant 0 : index
    %c36 = arith.constant 36 : index
    %108 = vector.load %arg6[%c0_124, %c36] : memref<4x362xf32, #tpu.memory_space<vmem>>, vector<4x324xf32>
    %c6_125 = arith.constant 6 : index
    %c0_126 = arith.constant 0 : index
    %c0_127 = arith.constant 0 : index
    %109 = vector.load %arg2[%c6_125, %c0_126, %c0_127] : memref<9x8x4xf32, #tpu.memory_space<vmem>>, vector<1x8x4xf32>
    %110 = vector.shape_cast %109 : vector<1x8x4xf32> to vector<8x4xf32>
    %cst_128 = arith.constant dense<0.000000e+00> : vector<8x324xf32>
    %111 = tpu.matmul %110, %108, %cst_128 {dimension_numbers = #tpu.dot_dimension_numbers<[1], [0], [0], [1], [0, 0, 1, 1], [], []>} : vector<8x4xf32>, vector<4x324xf32>, vector<8x324xf32> -> vector<8x324xf32>
    %112 = arith.addf %107, %111 : vector<8x324xf32>
    %c0_129 = arith.constant 0 : index
    %c37_130 = arith.constant 37 : index
    %113 = vector.load %arg6[%c0_129, %c37_130] : memref<4x362xf32, #tpu.memory_space<vmem>>, vector<4x324xf32>
    %c7_131 = arith.constant 7 : index
    %c0_132 = arith.constant 0 : index
    %c0_133 = arith.constant 0 : index
    %114 = vector.load %arg2[%c7_131, %c0_132, %c0_133] : memref<9x8x4xf32, #tpu.memory_space<vmem>>, vector<1x8x4xf32>
    %115 = vector.shape_cast %114 : vector<1x8x4xf32> to vector<8x4xf32>
    %cst_134 = arith.constant dense<0.000000e+00> : vector<8x324xf32>
    %116 = tpu.matmul %115, %113, %cst_134 {dimension_numbers = #tpu.dot_dimension_numbers<[1], [0], [0], [1], [0, 0, 1, 1], [], []>} : vector<8x4xf32>, vector<4x324xf32>, vector<8x324xf32> -> vector<8x324xf32>
    %117 = arith.addf %112, %116 : vector<8x324xf32>
    %c0_135 = arith.constant 0 : index
    %c38 = arith.constant 38 : index
    %118 = vector.load %arg6[%c0_135, %c38] : memref<4x362xf32, #tpu.memory_space<vmem>>, vector<4x324xf32>
    %c8_136 = arith.constant 8 : index
    %c0_137 = arith.constant 0 : index
    %c0_138 = arith.constant 0 : index
    %119 = vector.load %arg2[%c8_136, %c0_137, %c0_138] : memref<9x8x4xf32, #tpu.memory_space<vmem>>, vector<1x8x4xf32>
    %120 = vector.shape_cast %119 : vector<1x8x4xf32> to vector<8x4xf32>
    %cst_139 = arith.constant dense<0.000000e+00> : vector<8x324xf32>
    %121 = tpu.matmul %120, %118, %cst_139 {dimension_numbers = #tpu.dot_dimension_numbers<[1], [0], [0], [1], [0, 0, 1, 1], [], []>} : vector<8x4xf32>, vector<4x324xf32>, vector<8x324xf32> -> vector<8x324xf32>
    %122 = arith.addf %117, %121 : vector<8x324xf32>
    %c0_140 = arith.constant 0 : index
    %c0_141 = arith.constant 0 : index
    %123 = vector.load %arg3[%c0_140, %c0_141] : memref<8x1xf32, #tpu.memory_space<vmem>>, vector<8x1xf32>
    %124 = vector.broadcast %123 : vector<8x1xf32> to vector<8x324xf32>
    %125 = arith.addf %122, %124 : vector<8x324xf32>
    %126 = vector.extract_strided_slice %125 {offsets = [0, 19], sizes = [8, 16], strides = [1, 1]} : vector<8x324xf32> to vector<8x16xf32>
    %c0_142 = arith.constant 0 : index
    %c0_143 = arith.constant 0 : index
    %c0_144 = arith.constant 0 : index
    %127 = vector.load %arg4[%c0_142, %c0_143, %c0_144] : memref<1x8x256xf32, #tpu.memory_space<vmem>>, vector<1x8x16xf32>
    %128 = vector.shape_cast %127 : vector<1x8x16xf32> to vector<8x16xf32>
    %129 = vector.shape_cast %126 : vector<8x16xf32> to vector<1x8x16xf32>
    tpu.vector_store %arg4[%c0_142, %c0_143, %c0_144], %129 {strides = array<i32>} : memref<1x8x256xf32, #tpu.memory_space<vmem>>, vector<1x8x16xf32>,
    %130 = vector.extract_strided_slice %125 {offsets = [0, 37], sizes = [8, 16], strides = [1, 1]} : vector<8x324xf32> to vector<8x16xf32>
    %c0_145 = arith.constant 0 : index
    %c0_146 = arith.constant 0 : index
    %c16_147 = arith.constant 16 : index
    %131 = vector.load %arg4[%c0_145, %c0_146, %c16_147] : memref<1x8x256xf32, #tpu.memory_space<vmem>>, vector<1x8x16xf32>
    %132 = vector.shape_cast %131 : vector<1x8x16xf32> to vector<8x16xf32>
    %133 = vector.shape_cast %130 : vector<8x16xf32> to vector<1x8x16xf32>
    tpu.vector_store %arg4[%c0_145, %c0_146, %c16_147], %133 {strides = array<i32>} : memref<1x8x256xf32, #tpu.memory_space<vmem>>, vector<1x8x16xf32>,
    %134 = vector.extract_strided_slice %125 {offsets = [0, 55], sizes = [8, 16], strides = [1, 1]} : vector<8x324xf32> to vector<8x16xf32>
    %c0_148 = arith.constant 0 : index
    %c0_149 = arith.constant 0 : index
    %c32 = arith.constant 32 : index
    %135 = vector.load %arg4[%c0_148, %c0_149, %c32] : memref<1x8x256xf32, #tpu.memory_space<vmem>>, vector<1x8x16xf32>
    %136 = vector.shape_cast %135 : vector<1x8x16xf32> to vector<8x16xf32>
    %137 = vector.shape_cast %134 : vector<8x16xf32> to vector<1x8x16xf32>
    tpu.vector_store %arg4[%c0_148, %c0_149, %c32], %137 {strides = array<i32>} : memref<1x8x256xf32, #tpu.memory_space<vmem>>, vector<1x8x16xf32>,
    %138 = vector.extract_strided_slice %125 {offsets = [0, 73], sizes = [8, 16], strides = [1, 1]} : vector<8x324xf32> to vector<8x16xf32>
    %c0_150 = arith.constant 0 : index
    %c0_151 = arith.constant 0 : index
    %c48 = arith.constant 48 : index
    %139 = vector.load %arg4[%c0_150, %c0_151, %c48] : memref<1x8x256xf32, #tpu.memory_space<vmem>>, vector<1x8x16xf32>
    %140 = vector.shape_cast %139 : vector<1x8x16xf32> to vector<8x16xf32>
    %141 = vector.shape_cast %138 : vector<8x16xf32> to vector<1x8x16xf32>
    tpu.vector_store %arg4[%c0_150, %c0_151, %c48], %141 {strides = array<i32>} : memref<1x8x256xf32, #tpu.memory_space<vmem>>, vector<1x8x16xf32>,
    %142 = vector.extract_strided_slice %125 {offsets = [0, 91], sizes = [8, 16], strides = [1, 1]} : vector<8x324xf32> to vector<8x16xf32>
    %c0_152 = arith.constant 0 : index
    %c0_153 = arith.constant 0 : index
    %c64 = arith.constant 64 : index
    %143 = vector.load %arg4[%c0_152, %c0_153, %c64] : memref<1x8x256xf32, #tpu.memory_space<vmem>>, vector<1x8x16xf32>
    %144 = vector.shape_cast %143 : vector<1x8x16xf32> to vector<8x16xf32>
    %145 = vector.shape_cast %142 : vector<8x16xf32> to vector<1x8x16xf32>
    tpu.vector_store %arg4[%c0_152, %c0_153, %c64], %145 {strides = array<i32>} : memref<1x8x256xf32, #tpu.memory_space<vmem>>, vector<1x8x16xf32>,
    %146 = vector.extract_strided_slice %125 {offsets = [0, 109], sizes = [8, 16], strides = [1, 1]} : vector<8x324xf32> to vector<8x16xf32>
    %c0_154 = arith.constant 0 : index
    %c0_155 = arith.constant 0 : index
    %c80 = arith.constant 80 : index
    %147 = vector.load %arg4[%c0_154, %c0_155, %c80] : memref<1x8x256xf32, #tpu.memory_space<vmem>>, vector<1x8x16xf32>
    %148 = vector.shape_cast %147 : vector<1x8x16xf32> to vector<8x16xf32>
    %149 = vector.shape_cast %146 : vector<8x16xf32> to vector<1x8x16xf32>
    tpu.vector_store %arg4[%c0_154, %c0_155, %c80], %149 {strides = array<i32>} : memref<1x8x256xf32, #tpu.memory_space<vmem>>, vector<1x8x16xf32>,
    %150 = vector.extract_strided_slice %125 {offsets = [0, 127], sizes = [8, 16], strides = [1, 1]} : vector<8x324xf32> to vector<8x16xf32>
    %c0_156 = arith.constant 0 : index
    %c0_157 = arith.constant 0 : index
    %c96 = arith.constant 96 : index
    %151 = vector.load %arg4[%c0_156, %c0_157, %c96] : memref<1x8x256xf32, #tpu.memory_space<vmem>>, vector<1x8x16xf32>
    %152 = vector.shape_cast %151 : vector<1x8x16xf32> to vector<8x16xf32>
    %153 = vector.shape_cast %150 : vector<8x16xf32> to vector<1x8x16xf32>
    tpu.vector_store %arg4[%c0_156, %c0_157, %c96], %153 {strides = array<i32>} : memref<1x8x256xf32, #tpu.memory_space<vmem>>, vector<1x8x16xf32>,
    %154 = vector.extract_strided_slice %125 {offsets = [0, 145], sizes = [8, 16], strides = [1, 1]} : vector<8x324xf32> to vector<8x16xf32>
    %c0_158 = arith.constant 0 : index
    %c0_159 = arith.constant 0 : index
    %c112 = arith.constant 112 : index
    %155 = vector.load %arg4[%c0_158, %c0_159, %c112] : memref<1x8x256xf32, #tpu.memory_space<vmem>>, vector<1x8x16xf32>
    %156 = vector.shape_cast %155 : vector<1x8x16xf32> to vector<8x16xf32>
    %157 = vector.shape_cast %154 : vector<8x16xf32> to vector<1x8x16xf32>
    tpu.vector_store %arg4[%c0_158, %c0_159, %c112], %157 {strides = array<i32>} : memref<1x8x256xf32, #tpu.memory_space<vmem>>, vector<1x8x16xf32>,
    %158 = vector.extract_strided_slice %125 {offsets = [0, 163], sizes = [8, 16], strides = [1, 1]} : vector<8x324xf32> to vector<8x16xf32>
    %c0_160 = arith.constant 0 : index
    %c0_161 = arith.constant 0 : index
    %c128 = arith.constant 128 : index
    %159 = vector.load %arg4[%c0_160, %c0_161, %c128] : memref<1x8x256xf32, #tpu.memory_space<vmem>>, vector<1x8x16xf32>
    %160 = vector.shape_cast %159 : vector<1x8x16xf32> to vector<8x16xf32>
    %161 = vector.shape_cast %158 : vector<8x16xf32> to vector<1x8x16xf32>
    tpu.vector_store %arg4[%c0_160, %c0_161, %c128], %161 {strides = array<i32>} : memref<1x8x256xf32, #tpu.memory_space<vmem>>, vector<1x8x16xf32>,
    %162 = vector.extract_strided_slice %125 {offsets = [0, 181], sizes = [8, 16], strides = [1, 1]} : vector<8x324xf32> to vector<8x16xf32>
    %c0_162 = arith.constant 0 : index
    %c0_163 = arith.constant 0 : index
    %c144 = arith.constant 144 : index
    %163 = vector.load %arg4[%c0_162, %c0_163, %c144] : memref<1x8x256xf32, #tpu.memory_space<vmem>>, vector<1x8x16xf32>
    %164 = vector.shape_cast %163 : vector<1x8x16xf32> to vector<8x16xf32>
    %165 = vector.shape_cast %162 : vector<8x16xf32> to vector<1x8x16xf32>
    tpu.vector_store %arg4[%c0_162, %c0_163, %c144], %165 {strides = array<i32>} : memref<1x8x256xf32, #tpu.memory_space<vmem>>, vector<1x8x16xf32>,
    %166 = vector.extract_strided_slice %125 {offsets = [0, 199], sizes = [8, 16], strides = [1, 1]} : vector<8x324xf32> to vector<8x16xf32>
    %c0_164 = arith.constant 0 : index
    %c0_165 = arith.constant 0 : index
    %c160 = arith.constant 160 : index
    %167 = vector.load %arg4[%c0_164, %c0_165, %c160] : memref<1x8x256xf32, #tpu.memory_space<vmem>>, vector<1x8x16xf32>
    %168 = vector.shape_cast %167 : vector<1x8x16xf32> to vector<8x16xf32>
    %169 = vector.shape_cast %166 : vector<8x16xf32> to vector<1x8x16xf32>
    tpu.vector_store %arg4[%c0_164, %c0_165, %c160], %169 {strides = array<i32>} : memref<1x8x256xf32, #tpu.memory_space<vmem>>, vector<1x8x16xf32>,
    %170 = vector.extract_strided_slice %125 {offsets = [0, 217], sizes = [8, 16], strides = [1, 1]} : vector<8x324xf32> to vector<8x16xf32>
    %c0_166 = arith.constant 0 : index
    %c0_167 = arith.constant 0 : index
    %c176 = arith.constant 176 : index
    %171 = vector.load %arg4[%c0_166, %c0_167, %c176] : memref<1x8x256xf32, #tpu.memory_space<vmem>>, vector<1x8x16xf32>
    %172 = vector.shape_cast %171 : vector<1x8x16xf32> to vector<8x16xf32>
    %173 = vector.shape_cast %170 : vector<8x16xf32> to vector<1x8x16xf32>
    tpu.vector_store %arg4[%c0_166, %c0_167, %c176], %173 {strides = array<i32>} : memref<1x8x256xf32, #tpu.memory_space<vmem>>, vector<1x8x16xf32>,
    %174 = vector.extract_strided_slice %125 {offsets = [0, 235], sizes = [8, 16], strides = [1, 1]} : vector<8x324xf32> to vector<8x16xf32>
    %c0_168 = arith.constant 0 : index
    %c0_169 = arith.constant 0 : index
    %c192 = arith.constant 192 : index
    %175 = vector.load %arg4[%c0_168, %c0_169, %c192] : memref<1x8x256xf32, #tpu.memory_space<vmem>>, vector<1x8x16xf32>
    %176 = vector.shape_cast %175 : vector<1x8x16xf32> to vector<8x16xf32>
    %177 = vector.shape_cast %174 : vector<8x16xf32> to vector<1x8x16xf32>
    tpu.vector_store %arg4[%c0_168, %c0_169, %c192], %177 {strides = array<i32>} : memref<1x8x256xf32, #tpu.memory_space<vmem>>, vector<1x8x16xf32>,
    %178 = vector.extract_strided_slice %125 {offsets = [0, 253], sizes = [8, 16], strides = [1, 1]} : vector<8x324xf32> to vector<8x16xf32>
    %c0_170 = arith.constant 0 : index
    %c0_171 = arith.constant 0 : index
    %c208 = arith.constant 208 : index
    %179 = vector.load %arg4[%c0_170, %c0_171, %c208] : memref<1x8x256xf32, #tpu.memory_space<vmem>>, vector<1x8x16xf32>
    %180 = vector.shape_cast %179 : vector<1x8x16xf32> to vector<8x16xf32>
    %181 = vector.shape_cast %178 : vector<8x16xf32> to vector<1x8x16xf32>
    tpu.vector_store %arg4[%c0_170, %c0_171, %c208], %181 {strides = array<i32>} : memref<1x8x256xf32, #tpu.memory_space<vmem>>, vector<1x8x16xf32>,
    %182 = vector.extract_strided_slice %125 {offsets = [0, 271], sizes = [8, 16], strides = [1, 1]} : vector<8x324xf32> to vector<8x16xf32>
    %c0_172 = arith.constant 0 : index
    %c0_173 = arith.constant 0 : index
    %c224 = arith.constant 224 : index
    %183 = vector.load %arg4[%c0_172, %c0_173, %c224] : memref<1x8x256xf32, #tpu.memory_space<vmem>>, vector<1x8x16xf32>
    %184 = vector.shape_cast %183 : vector<1x8x16xf32> to vector<8x16xf32>
    %185 = vector.shape_cast %182 : vector<8x16xf32> to vector<1x8x16xf32>
    tpu.vector_store %arg4[%c0_172, %c0_173, %c224], %185 {strides = array<i32>} : memref<1x8x256xf32, #tpu.memory_space<vmem>>, vector<1x8x16xf32>,
    %186 = vector.extract_strided_slice %125 {offsets = [0, 289], sizes = [8, 16], strides = [1, 1]} : vector<8x324xf32> to vector<8x16xf32>
    %c0_174 = arith.constant 0 : index
    %c0_175 = arith.constant 0 : index
    %c240 = arith.constant 240 : index
    %187 = vector.load %arg4[%c0_174, %c0_175, %c240] : memref<1x8x256xf32, #tpu.memory_space<vmem>>, vector<1x8x16xf32>
    %188 = vector.shape_cast %187 : vector<1x8x16xf32> to vector<8x16xf32>
    %189 = vector.shape_cast %186 : vector<8x16xf32> to vector<1x8x16xf32>
    tpu.vector_store %arg4[%c0_174, %c0_175, %c240], %189 {strides = array<i32>} : memref<1x8x256xf32, #tpu.memory_space<vmem>>, vector<1x8x16xf32>,
    return
  }
  func.func @transform_0(%arg0: i32) -> (i32, i32, i32, i32) {
    %c0_i32 = arith.constant 0 : i32
    %c0_i32_0 = arith.constant 0 : i32
    %c0_i32_1 = arith.constant 0 : i32
    %c0_i32_2 = arith.constant 0 : i32
    return %arg0, %c0_i32, %c0_i32_0, %c0_i32_1 : i32, i32, i32, i32
  }
  func.func @transform_1(%arg0: i32) -> (i32, i32, i32) {
    %c0_i32 = arith.constant 0 : i32
    %c0_i32_0 = arith.constant 0 : i32
    %c0_i32_1 = arith.constant 0 : i32
    %c0_i32_2 = arith.constant 0 : i32
    return %c0_i32, %c0_i32_0, %c0_i32_1 : i32, i32, i32
  }
  func.func @transform_2(%arg0: i32) -> (i32, i32) {
    %c0_i32 = arith.constant 0 : i32
    %c0_i32_0 = arith.constant 0 : i32
    %c0_i32_1 = arith.constant 0 : i32
    return %c0_i32, %c0_i32_0 : i32, i32
  }
  func.func @transform_3(%arg0: i32) -> (i32, i32, i32) {
    %c0_i32 = arith.constant 0 : i32
    %c0_i32_0 = arith.constant 0 : i32
    %c0_i32_1 = arith.constant 0 : i32
    return %arg0, %c0_i32, %c0_i32_0 : i32, i32, i32
  }
}

</mosaic_0001>

<bundles_post_ra>
// kernel: conv3x3_pallas.1
= control target key start
LH: loop header
LB: loop body
LE: loop exit
PB: predicated region body
PF: predicated region fallthrough
CT: control target
= control target key end

     0   :  { %8 = vsyncpa [#allocation5], 0  ;;  %s2465_s0 = inlined_call_operand.hbm [shape: f32[2,4,16,16], index: 0, kind: input, shape index: {}]   ;;  %s2466_s1 = inlined_call_operand.vmem [shape: f32[9,8,4], index: 1, kind: input, shape index: {}]   ;;  %s2467_s2 = inlined_call_operand.vmem [shape: f32[8,1], index: 2, kind: input, shape index: {}]   ;;  %s2468_s3 = inlined_call_operand.vmem [shape: f32[2,8,256], index: 3, kind: output, shape index: {}]  }
   0x1   :  { %10 = vsyncpa [#allocation5 + $0x1], 0  ;;  %s2015_s12 = smov 0   ;;  %s2017_s13 = smov 0  }
   0x2   :  { %s2019_s14 = smov 0   ;;  %s2021_s15 = smov 0  }
   0x3 LB: > { %s2034_s16 = sadd.s32 4294967295, %s1952_s15   ;;  %s2037_s17 = sadd.s32 1, %s1952_s15   ;;  %s1952_s15 = sphi %s2021_s15, %s2475_s15   ;;  %s1948_s14 = sphi %s2019_s14, %s2474_s14   ;;  %s1944_s13 = sphi %s2017_s13, %s2473_s13   ;;  %s1940_s12 = sphi %s2015_s12, %s2472_s12  }
   0x4   : > { %s20_s18 = ssub.s32 %s1952_s15, %s2037_s17  ;;  %s23_s19 = sadd.s32 1, %s1948_s14 }
   0x5   : > { %p21_p0 = scmp.eq.s32.totalorder %s20_s18, 0  ;;  %p30_p1 = scmp.ne.s32.totalorder %s1948_s14, %s1944_s13 }
   0x6   : > { %p31_p2 = scmp.eq.s32.totalorder %s1952_s15, 0  ;;  %p36_p3 = scmp.ne.s32.totalorder %s1944_s13, %s1940_s12 }
   0x7   : > { %s2047_s20 = scalar_select %p21_p0, %s1948_s14, %s23_s19  }
   0x8   : > { %p2049_p4 = por %p31_p2, %p30_p1  ;;  %p37_p5 = scmp.eq.s32.totalorder %s2034_s16, 0 }
   0x9   : > { %p1813_p6 = scmp.lt.s32.totalorder %s1952_s15, 2  ;;  %s134_s23 = sand.u32 1, %s1948_s14  }
   0xa   : > { %p2055_p7 = por %p37_p5, %p36_p3  ;;  %s1734_s24 = sshll.u32 %s134_s23, 6 }
   0xb   : > { %s1805_s25 = sshll.u32 %s1952_s15, 6  ;;  %s138_s29 = scalar_lea.vmem [#allocation4], %s1734_s24 }
   0xc   : > { %s143_s28 = scalar_lea.hbm %s2465_s0, %s1805_s25  ;;  %s146_s30 = sshll.u32 %s138_s29, 4  ;;  %s147_s30 = int_to_ptr.vmem [resolvable:$true] %s146_s30 }
   0xd   : > { %s144_s4 = sshll.u32 %s143_s28, 4  ;;  %p2066_p8 = pnand %p1813_p6, %p2049_p4  ;;  %s145_s4 = int_to_ptr.hbm [resolvable:$true] %s144_s4 }
   0xe   : > { %p1737_p9 = scmp.ge.s32.totalorder %s1952_s15, 1  ;;  %s135_s6 = scalar_lea.sflag [#allocation5], %s134_s23 }
   0xf   : > { %s1888_s7 = sshra.s32 %s145_s4, 4  ;;  %p1892_p11 = pneg %p2066_p8  ;;  %s1889_s7 = int_to_ptr.hbm [resolvable:$true] %s1888_s7 }
  0x10   : > { %s1890_s8 = scalar_lea.hbm %s1889_s7, 64  ;;  %s1895_s11 = scalar_lea.hbm %s2465_s0, 128 }
  0x11   : > { %p1891_p10 = scmp.ne.s32.totalorder %s1889_s7, %s1890_s8  ;;  %p1896_p0 = scmp.lt.s32.totalorder %s1889_s7, %s2465_s0 }
  0x12   : > { %p1897_p1 = scmp.lt.s32.totalorder %s1895_s11, %s1890_s8 }
  0x13   : > { %p1893_p12 = pnand %p1892_p11, %p1891_p10 }
  0x14   : > { %p1898_p2 = por %p1897_p1, %p1896_p0 }
  0x15   : > { %p1894_p13 = pneg %p1893_p12 }
  0x17   : > { %p1899_p3 = pnand %p1898_p2, %p1894_p13 }
  0x19   : > { %1902 = shalt.err (!%p1899_p3)
}
  0x1a   : > { %s1954_s19 = smov 128   ;;  %s1955_s21 = smov 8  }
  0x1b   : > { %1812 = dma.hbm_to_vmem [thread:$0]  (!%p2066_p8), %s145_s4, 1024, %s147_s30, %s135_s6, %s1954_s19, %s1954_s19, %s1955_s21  }
  0x1c   : > { %p154_p4 = scmp.lt.s32.totalorder %s1952_s15, 3 }
  0x1e   : > { %p155_p5 = pnand %p1737_p9, %p154_p4 }
  0x1f   : > { %s160_s23 = sand.u32 (!%p155_p5), 1, %s1944_s13  }
  0x20   : > { %158 = sbr.rel (%p155_p5) target bundleno = 854 (0x356), region = 32  ;;  %s1738_s24 = sshll.u32 (!%p155_p5), %s160_s23, 6 }
  0x21   : > { %s161_s25 = scalar_lea.sflag (!%p155_p5), [#allocation5], %s160_s23  ;;  %s2085_s26 = scalar_lea.vmem (!%p155_p5), [#allocation4], %s1738_s24 }
  0x25   : > { %1935 = dma.done.wait (%p2055_p7), %s161_s25, 1024  }
  0x26   : > { %1937 = vsyncadd (%p2055_p7), %s161_s25, 4294966272  ;;  %v199_v0 = vld [vmem:[%s2085_s26 + $0x10] sm:$0xff]  ;;  %v197_v1 = vld [vmem:[%s2085_s26] sm:$0xff]  ;;  %s1956_s15 = smov 1   ;;  %s1957_s27 = smov 3   ;;  %vm237_vm0 = vcmask 138248  }
  0x27   : > { %217 = vrot.lane.b32.xlu0 %v199_v0, %s1956_s15  ;;  %213 = vrot.lane.b32.xlu1 %v197_v1, %s1956_s15  ;;  %v201_v2 = vld [vmem:[%s2085_s26 + $0x20] sm:$0xff]  ;;  %s1958_s28 = smov 127   ;;  %v203_v3 = vld [vmem:[%s2085_s26 + $0x30] sm:$0xff]  ;;  %vm246_vm1 = vcmask 132105   ;;  %vm280_vm2 = vcmask 7168   ;;  %vm322_vm3 = vcmask 1025  }
  0x28   : > { %293 = vrot.lane.b32.xlu2 %v199_v0, %s1957_s27  ;;  %v200_v4 = vld [vmem:[%s2085_s26 + $0x18] sm:$0xff]  ;;  %v198_v5 = vld [vmem:[%s2085_s26 + $0x8] sm:$0xff]  ;;  %vm313_vm4 = vcmask 146568   ;;  %vm327_vm5 = vcmask 140425   ;;  %vm251_vm6 = vcmask 137230   ;;  %vm332_vm7 = vcmask 6150  }
  0x29   : > { %v202_v6 = vld [vmem:[%s2085_s26 + $0x28] sm:$0xff]  ;;  %v204_v7 = vld [vmem:[%s2085_s26 + $0x38] sm:$0xff]  ;;  %vm351_vm8 = vcmask 1041409   ;;  %vm353_vm9 = vcmask 1045509   ;;  %vm356_vm10 = vcmask 1042434   ;;  %vm358_vm11 = vcmask 1046534  }
  0x2a   : > { %vm361_vm12 = vcmask 1043459   ;;  %vm363_vm13 = vcmask 1047559   ;;  %vm337_vm14 = vcmask 145550   ;;  %s1959_s22 = smov 55   ;;  %s1960_s29 = smov 37   ;;  %vm193_vm15 = vcmask 150528  }
  0x2b   : > { %s1961_s30 = smov 19   ;;  %s1962_s4 = smov 91  }
  0x2c   : > { %s1963_s5 = smov 73   ;;  %s1964_s6 = smov 35  }
  0x2d   : > { %s1965_s7 = smov 17   ;;  %s1966_s8 = smov 109  }
  0x2e   : > { %s1967_s9 = smov 125   ;;  %s1968_s10 = smov 71  }
  0x2f   : > { %260 = vrot.lane.b32.xlu0 %v199_v0, %s1958_s28  ;;  %221 = vrot.lane.b32.xlu1 %v201_v2, %s1956_s15  ;;  %s1969_s11 = smov 53   ;;  %s1970_s12 = smov 15  }
  0x30   : > { %256 = vrot.lane.b32.xlu2 %v197_v1, %s1958_s28  ;;  %s1971_s18 = smov 107   ;;  %s1972_s19 = smov 89  }
  0x31   : > { %s1973_s21 = smov 69   ;;  %s1974_s23 = smov 51  }
  0x32   : > { %s1975_s24 = smov 33   ;;  %s1977_s25 = smov 126  }
  0x33   : > { %s1978_s26 = smov 110   ;;  %p188_p6 = scmp.lt.s32.totalorder %s2034_s16, 1 }
  0x35   : > { %s2477_s16 = smov (!%p188_p6, %s2034_s16), 1 }
  0x37   : > { %264 = vrot.lane.b32.xlu0 %v201_v2, %s1958_s28  ;;  %225 = vrot.lane.b32.xlu1 %v203_v3, %s1956_s15 }
  0x38   : > { %289 = vrot.lane.b32.xlu2 %v197_v1, %s1957_s27 }
  0x3f   : > { %297 = vrot.lane.b32.xlu0 %v201_v2, %s1957_s27  ;;  %268 = vrot.lane.b32.xlu1 %v203_v3, %s1958_s28 }
  0x40   : > { %301 = vrot.lane.b32.xlu2 %v203_v3, %s1957_s27 }
  0x47   : > { %219 = vrot.lane.b32.xlu0 %v200_v4, %s1956_s15  ;;  %262 = vrot.lane.b32.xlu1 %v200_v4, %s1958_s28 }
  0x48   : > { %215 = vrot.lane.b32.xlu2 %v198_v5, %s1956_s15 }
  0x4f   : > { %223 = vrot.lane.b32.xlu0 %v202_v6, %s1956_s15  ;;  %295 = vrot.lane.b32.xlu1 %v200_v4, %s1957_s27 }
  0x50   : > { %258 = vrot.lane.b32.xlu2 %v198_v5, %s1958_s28 }
  0x57   : > { %266 = vrot.lane.b32.xlu0 %v202_v6, %s1958_s28  ;;  %227 = vrot.lane.b32.xlu1 %v204_v7, %s1956_s15  ;;  %s1979_s15 = smov 92  }
  0x58   : > { %291 = vrot.lane.b32.xlu2 %v198_v5, %s1957_s27 }
  0x5f   : > { %299 = vrot.lane.b32.xlu0 %v202_v6, %s1957_s27  ;;  %270 = vrot.lane.b32.xlu1 %v204_v7, %s1958_s28 }
  0x60   : > { %303 = vrot.lane.b32.xlu2 %v204_v7, %s1957_s27  ;;  %s1980_s27 = smov 108  }
  0x82   : > { %v294_v8 = vpop.permute.xlu2 %293 }
  0x8a   : > { %v257_v9 = vpop.permute.xlu2 %256 }
  0x92   : > { %v290_v10 = vpop.permute.xlu2 %289 }
  0x99   : > { %v218_v11 = vpop.permute.xlu0 %217  ;;  %v214_v12 = vpop.permute.xlu1 %213 }
  0x9a   : > { %240 = vst.msk [vmem:[#allocation2 + $0x19] sm:$0xff] %vm237_vm0, %v218_v11  ;;  %v302_v13 = vpop.permute.xlu2 %301 }
  0x9b   : > { %248 = vst.msk [vmem:[#allocation2 + $0x17] sm:$0x2] %vm246_vm1, %v218_v11 }
  0x9c   : > { %238 = vst.msk [vmem:[#allocation2 + $0x1] sm:$0xff] %vm237_vm0, %v214_v12 }
  0x9d   : > { %247 = vst.msk [vmem:[#allocation2 - $0x1] sm:$0x2] %vm246_vm1, %v214_v12 }
  0x9e   : > { %281 = vst.msk [vmem:[#allocation2 + $0x1] sm:$0xff] %vm280_vm2, %v257_v9 }
  0x9f   : > { %323 = vst.msk [vmem:[#allocation2 - $0x1] sm:$0x2] %vm322_vm3, %v257_v9 }
  0xa0   : > { %314 = vst.msk [vmem:[#allocation2 + $0x1] sm:$0xff] %vm313_vm4, %v290_v10 }
  0xa1   : > { %v261_v14 = vpop.permute.xlu0 %260  ;;  %v222_v15 = vpop.permute.xlu1 %221  ;;  %328 = vst.msk [vmem:[#allocation2 - $0x1] sm:$0x2] %vm327_vm5, %v290_v10 }
  0xa2   : > { %283 = vst.msk [vmem:[#allocation2 + $0x19] sm:$0xff] %vm280_vm2, %v261_v14  ;;  %v216_v16 = vpop.permute.xlu2 %215 }
  0xa3   : > { %316 = vst.msk [vmem:[#allocation2 + $0x19] sm:$0xff] %vm313_vm4, %v294_v8 }
  0xa4   : > { %324 = vst.msk [vmem:[#allocation2 + $0x17] sm:$0x2] %vm322_vm3, %v261_v14 }
  0xa5   : > { %329 = vst.msk [vmem:[#allocation2 + $0x17] sm:$0x2] %vm327_vm5, %v294_v8 }
  0xa6   : > { %242 = vst.msk [vmem:[#allocation2 + $0x31] sm:$0xff] %vm237_vm0, %v222_v15 }
  0xa7   : > { %249 = vst.msk [vmem:[#allocation2 + $0x2f] sm:$0x2] %vm246_vm1, %v222_v15  ;;  %v392_v27 = vld [vmem:[#allocation2 + $0x2] sm:$0x1]  ;;  %v370_v29 = vld [vmem:[#allocation2 + $0x1] sm:$0x1] }
  0xa8   : > { %239 = vst.msk [vmem:[#allocation2 + $0x9] sm:$0xff] %vm237_vm0, %v216_v16  ;;  %v414_v34 = vld [vmem:[#allocation2 + $0x3] sm:$0x1]  ;;  %v342_v35 = vld [vmem:[#allocation2] sm:$0x1] }
  0xa9   : > { %v265_v17 = vpop.permute.xlu0 %264  ;;  %v226_v18 = vpop.permute.xlu1 %225  ;;  %252 = vst.msk [vmem:[#allocation2 + $0xb] sm:$0x40] %vm251_vm6, %v216_v16  ;;  %v436_v41 = vld [vmem:[#allocation2 + $0x4] sm:$0x1]  ;;  %v480_v54 = vld [vmem:[#allocation2 + $0x6] sm:$0x1] }
  0xaa   : > { %285 = vst.msk [vmem:[#allocation2 + $0x31] sm:$0xff] %vm280_vm2, %v265_v17  ;;  %v259_v19 = vpop.permute.xlu2 %258  ;;  %v393_v20 = vld [vmem:[#allocation2 + $0x1a] sm:$0x1]  ;;  %v371_v21 = vld [vmem:[#allocation2 + $0x19] sm:$0x1] }
  0xab   : > { %325 = vst.msk [vmem:[#allocation2 + $0x2f] sm:$0x2] %vm322_vm3, %v265_v17  ;;  %v415_v24 = vld [vmem:[#allocation2 + $0x1b] sm:$0x1]  ;;  %v400_v26 = vrot.slane %v393_v20, 7  ;;  %v378_v28 = vrot.slane %v371_v21, 7 }
  0xac   : > { %244 = vst.msk [vmem:[#allocation2 + $0x49] sm:$0xff] %vm237_vm0, %v226_v18  ;;  %v343_v25 = vld [vmem:[#allocation2 + $0x18] sm:$0x1]  ;;  %v422_v30 = vrot.slane %v415_v24, 7  ;;  %v437_v31 = vld [vmem:[#allocation2 + $0x1c] sm:$0x1] }
  0xad   : > { %250 = vst.msk [vmem:[#allocation2 + $0x47] sm:$0x2] %vm246_vm1, %v226_v18  ;;  %v350_v32 = vrot.slane %v343_v25, 7  ;;  %v401_v36 = vsel %vm351_vm8, %v400_v26, %v392_v27  ;;  %v379_v37 = vsel %vm351_vm8, %v378_v28, %v370_v29  ;;  %v444_v38 = vrot.slane %v437_v31, 7  ;;  %v2137_v39 = vld [vmem:[#allocation2 + $0x1e] sm:$0x1] }
  0xae   : > { %282 = vst.msk [vmem:[#allocation2 + $0x9] sm:$0xff] %vm280_vm2, %v259_v19  ;;  %v423_v40 = vsel %vm351_vm8, %v422_v30, %v414_v34  ;;  %v2141_v42 = vld [vmem:[#allocation2 + $0x1d] sm:$0x1]  ;;  %v402_v47 = vsel %vm353_vm9, %v400_v26, %v401_v36  ;;  %v2146_v49 = vld [vmem:[#allocation2 + $0x20] sm:$0x1]  ;;  %v380_v52 = vsel %vm353_vm9, %v378_v28, %v379_v37  ;;  %v488_v55 = vrot.slane %v2137_v39, 7 }
  0xaf   : > { %333 = vst.msk [vmem:[#allocation2 + $0xb] sm:$0x40] %vm332_vm7, %v259_v19  ;;  %v352_v45 = vsel %vm351_vm8, %v350_v32, %v342_v35  ;;  %v424_v58 = vsel %vm353_vm9, %v422_v30, %v423_v40  ;;  %v445_v59 = vsel %vm351_vm8, %v444_v38, %v436_v41  ;;  %v466_v60 = vrot.slane %v2141_v42, 7  ;;  %v2166_v7 = vld [vmem:[#allocation2 + $0x1f] sm:$0x1] }
  0xb0   : > { %v354_v61 = vsel %vm353_vm9, %v350_v32, %v352_v45  ;;  %v446_v12 = vsel %vm353_vm9, %v444_v38, %v445_v59  ;;  %v537_v14 = vrot.slane %v2146_v49, 7  ;;  %v489_v20 = vsel %vm351_vm8, %v488_v55, %v480_v54  ;;  %v507_v21 = vld [vmem:[#allocation2 + $0x7] sm:$0x1]  ;;  %v458_v27 = vld [vmem:[#allocation2 + $0x5] sm:$0x1] }
  0xb1   : > { %v298_v22 = vpop.permute.xlu0 %297  ;;  %v269_v23 = vpop.permute.xlu1 %268  ;;  %v515_v28 = vrot.slane %v2166_v7, 7  ;;  %v490_v45 = vsel %vm353_vm9, %v488_v55, %v489_v20  ;;  %vm368_vm1 = vcmask 298136  }
  0xb2   : > { %318 = vst.msk [vmem:[#allocation2 + $0x31] sm:$0xff] %vm313_vm4, %v298_v22  ;;  %v292_v33 = vpop.permute.xlu2 %291 }
  0xb3   : > { %330 = vst.msk [vmem:[#allocation2 + $0x2f] sm:$0x2] %vm327_vm5, %v298_v22 }
  0xb4   : > { %287 = vst.msk [vmem:[#allocation2 + $0x49] sm:$0xff] %vm280_vm2, %v269_v23 }
  0xb5   : > { %320 = vst.msk [vmem:[#allocation2 + $0x49] sm:$0xff] %vm313_vm4, %v302_v13 }
  0xb6   : > { %326 = vst.msk [vmem:[#allocation2 + $0x47] sm:$0x2] %vm322_vm3, %v269_v23  ;;  %vm412_vm3 = vcmask 593336  }
  0xb7   : > { %331 = vst.msk [vmem:[#allocation2 + $0x47] sm:$0x2] %vm327_vm5, %v302_v13  ;;  %v529_v13 = vld [vmem:[#allocation2 + $0x8] sm:$0x1]  ;;  %vm456_vm5 = vcmask 888536  }
  0xb8   : > { %315 = vst.msk [vmem:[#allocation2 + $0x9] sm:$0xff] %vm313_vm4, %v292_v33 }
  0xb9   : > { %v220_v43 = vpop.permute.xlu0 %219  ;;  %v263_v44 = vpop.permute.xlu1 %262  ;;  %v394_v46 = vld [vmem:[#allocation2 + $0x32] sm:$0x1]  ;;  %v372_v48 = vld [vmem:[#allocation2 + $0x31] sm:$0x1]  ;;  %338 = vst.msk [vmem:[#allocation2 + $0xb] sm:$0x40] %vm337_vm14, %v292_v33 }
  0xba   : > { %241 = vst.msk [vmem:[#allocation2 + $0x21] sm:$0xff] %vm237_vm0, %v220_v43  ;;  %v344_v50 = vld [vmem:[#allocation2 + $0x30] sm:$0x1]  ;;  %v403_v51 = vrot.slane %v394_v46, 6  ;;  %v381_v53 = vrot.slane %v372_v48, 6  ;;  %v538_v46 = vsel %vm351_vm8, %v537_v14, %v529_v13 }
  0xbb   : > { %253 = vst.msk [vmem:[#allocation2 + $0x23] sm:$0x40] %vm251_vm6, %v220_v43  ;;  %v355_v56 = vrot.slane %v344_v50, 6  ;;  %v2152_v57 = vld [vmem:[#allocation2 + $0x33] sm:$0x1]  ;;  %v516_v50 = vsel %vm351_vm8, %v515_v28, %v507_v21 }
  0xbc   : > { %284 = vst.msk [vmem:[#allocation2 + $0x21] sm:$0xff] %vm280_vm2, %v263_v44  ;;  %v395_v62 = vld [vmem:[#allocation2 + $0x4a] sm:$0x1]  ;;  %v404_v63 = vsel %vm356_vm10, %v403_v51, %v402_v47  ;;  %v373_v0 = vld [vmem:[#allocation2 + $0x49] sm:$0x1]  ;;  %v382_v1 = vsel %vm356_vm10, %v381_v53, %v380_v52  ;;  %v425_v2 = vrot.slane %v2152_v57, 6  ;;  %v539_v57 = vsel %vm353_vm9, %v537_v14, %v538_v46 }
  0xbd   : > { %334 = vst.msk [vmem:[#allocation2 + $0x23] sm:$0x40] %vm332_vm7, %v263_v44  ;;  %v357_v3 = vsel %vm356_vm10, %v355_v56, %v354_v61  ;;  %v405_v4 = vsel %vm358_vm11, %v403_v51, %v404_v63  ;;  %v406_v5 = vrot.slane %v395_v62, 5  ;;  %v383_v6 = vsel %vm358_vm11, %v381_v53, %v382_v1  ;;  %v438_v11 = vld [vmem:[#allocation2 + $0x34] sm:$0x1] }
  0xbe   : > { %v345_v8 = vld [vmem:[#allocation2 + $0x48] sm:$0x1]  ;;  %v359_v9 = vsel %vm358_vm11, %v355_v56, %v357_v3  ;;  %v384_v10 = vrot.slane %v373_v0, 5  ;;  %v439_v17 = vld [vmem:[#allocation2 + $0x4c] sm:$0x1]  ;;  %v447_v18 = vrot.slane %v438_v11, 6  ;;  %v426_v25 = vsel %vm356_vm10, %v425_v2, %v424_v58 }
  0xbf   : > { %v360_v15 = vrot.slane %v345_v8, 5  ;;  %v407_v16 = vsel %vm361_vm12, %v406_v5, %v405_v4  ;;  %v482_v19 = vld [vmem:[#allocation2 + $0x36] sm:$0x1]  ;;  %v417_v24 = vld [vmem:[#allocation2 + $0x4b] sm:$0x1]  ;;  %v450_v34 = vrot.slane %v439_v17, 5  ;;  %v427_v48 = vsel %vm358_vm11, %v425_v2, %v426_v25 }
  0xc0   : > { %v408_v22 = vsel %vm363_vm13, %v406_v5, %v407_v16  ;;  %v385_v23 = vsel %vm361_vm12, %v384_v10, %v383_v6  ;;  %v483_v26 = vld [vmem:[#allocation2 + $0x4e] sm:$0x1]  ;;  %v448_v33 = vsel %vm356_vm10, %v447_v18, %v446_v12  ;;  %v460_v35 = vld [vmem:[#allocation2 + $0x35] sm:$0x1]  ;;  %v531_v36 = vld [vmem:[#allocation2 + $0x38] sm:$0x1]  ;;  %v467_v53 = vsel %vm351_vm8, %v466_v60, %v458_v27 }
  0xc1   : > { %v362_v29 = vsel %vm361_vm12, %v360_v15, %v359_v9  ;;  %409 = vrot.lane.b32.xlu2 %v408_v22, %s1959_s22  ;;  %v386_v30 = vsel %vm363_vm13, %v384_v10, %v385_v23  ;;  %v224_v31 = vpop.permute.xlu0 %223  ;;  %v296_v32 = vpop.permute.xlu1 %295  ;;  %v449_v38 = vsel %vm358_vm11, %v447_v18, %v448_v33  ;;  %v491_v40 = vrot.slane %v482_v19, 6  ;;  %v509_v43 = vld [vmem:[#allocation2 + $0x37] sm:$0x1]  ;;  %v532_v56 = vld [vmem:[#allocation2 + $0x50] sm:$0x1] }
  0xc2   : > { %v364_v37 = vsel %vm363_vm13, %v360_v15, %v362_v29  ;;  %387 = vrot.lane.b32.xlu1 %v386_v30, %s1960_s29  ;;  %243 = vst.msk [vmem:[#allocation2 + $0x39] sm:$0xff] %vm237_vm0, %v224_v31  ;;  %v494_v41 = vrot.slane %v483_v26, 5  ;;  %v428_v44 = vrot.slane %v417_v24, 5  ;;  %v540_v47 = vrot.slane %v531_v36, 6  ;;  %v510_v61 = vld [vmem:[#allocation2 + $0x4f] sm:$0x1] }
  0xc3   : > { %365 = vrot.lane.b32.xlu0 %v364_v37, %s1961_s30  ;;  %254 = vst.msk [vmem:[#allocation2 + $0x3b] sm:$0x40] %vm251_vm6, %v224_v31  ;;  %v492_v49 = vsel %vm356_vm10, %v491_v40, %v490_v45  ;;  %v518_v51 = vrot.slane %v509_v43, 6  ;;  %v451_v52 = vsel %vm361_vm12, %v450_v34, %v449_v38  ;;  %v469_v54 = vrot.slane %v460_v35, 6  ;;  %v461_v0 = vld [vmem:[#allocation2 + $0x4d] sm:$0x1] }
  0xc4   : > { %317 = vst.msk [vmem:[#allocation2 + $0x21] sm:$0xff] %vm313_vm4, %v296_v32  ;;  %v493_v39 = vsel %vm358_vm11, %v491_v40, %v492_v49  ;;  %v429_v58 = vsel %vm361_vm12, %v428_v44, %v427_v48  ;;  %v541_v59 = vsel %vm356_vm10, %v540_v47, %v539_v57  ;;  %v517_v62 = vsel %vm353_vm9, %v515_v28, %v516_v50  ;;  %v639_v22 = vld [vmem:[#allocation2 + $0xd] sm:$0x1]  ;;  %v304_v28 = vpop.permute.xlu2 %303  ;;  %v573_v29 = vld [vmem:[#allocation2 + $0xa] sm:$0x1]  ;;  %s1983_s30 = smov 97  }
  0xc5   : > { %339 = vst.msk [vmem:[#allocation2 + $0x23] sm:$0x40] %vm337_vm14, %v296_v32  ;;  %v495_v55 = vsel %vm361_vm12, %v494_v41, %v493_v39  ;;  %v452_v63 = vsel %vm363_vm13, %v450_v34, %v451_v52  ;;  %v468_v1 = vsel %vm353_vm9, %v466_v60, %v467_v53  ;;  %v519_v2 = vsel %vm356_vm10, %v518_v51, %v517_v62  ;;  %v551_v30 = vld [vmem:[#allocation2 + $0x9] sm:$0x1]  ;;  %v666_v36 = vld [vmem:[#allocation2 + $0xe] sm:$0x1] }
  0xc6   : > { %v496_v3 = vsel %vm363_vm13, %v494_v41, %v495_v55  ;;  %v470_v6 = vsel %vm356_vm10, %v469_v54, %v468_v1  ;;  %v543_v7 = vrot.slane %v532_v56, 5  ;;  %v430_v8 = vsel %vm363_vm13, %v428_v44, %v429_v58  ;;  %v617_v40 = vld [vmem:[#allocation2 + $0xc] sm:$0x1] }
  0xc7   : > { %v542_v42 = vsel %vm358_vm11, %v540_v47, %v541_v59  ;;  %v521_v60 = vrot.slane %v510_v61, 5  ;;  %v472_v9 = vrot.slane %v461_v0, 5  ;;  %v520_v10 = vsel %vm358_vm11, %v518_v51, %v519_v2  ;;  %v595_v51 = vld [vmem:[#allocation2 + $0xb] sm:$0x1] }
  0xc8   : > { %v471_v11 = vsel %vm358_vm11, %v469_v54, %v470_v6  ;;  %v544_v12 = vsel %vm361_vm12, %v543_v7, %v542_v42 }
  0xc9   : > { %453 = vrot.lane.b32.xlu2 %v452_v63, %s1962_s4  ;;  %v267_v4 = vpop.permute.xlu0 %266  ;;  %v228_v5 = vpop.permute.xlu1 %227  ;;  %v522_v13 = vsel %vm361_vm12, %v521_v60, %v520_v10  ;;  %v473_v14 = vsel %vm361_vm12, %v472_v9, %v471_v11  ;;  %v545_v18 = vsel %vm363_vm13, %v543_v7, %v544_v12 }
  0xca   : > { %497 = vrot.lane.b32.xlu1 %v496_v3, %s1958_s28  ;;  %286 = vst.msk [vmem:[#allocation2 + $0x39] sm:$0xff] %vm280_vm2, %v267_v4  ;;  %v523_v19 = vsel %vm363_vm13, %v521_v60, %v522_v13  ;;  %v474_v23 = vsel %vm363_vm13, %v472_v9, %v473_v14 }
  0xcb   : > { %431 = vrot.lane.b32.xlu0 %v430_v8, %s1963_s5  ;;  %335 = vst.msk [vmem:[#allocation2 + $0x3b] sm:$0x40] %vm332_vm7, %v267_v4  ;;  %v640_v15 = vld [vmem:[#allocation2 + $0x25] sm:$0x1]  ;;  %v574_v16 = vld [vmem:[#allocation2 + $0x22] sm:$0x1] }
  0xcc   : > { %245 = vst.msk [vmem:[#allocation2 + $0x51] sm:$0xff] %vm237_vm0, %v228_v5  ;;  %v552_v17 = vld [vmem:[#allocation2 + $0x21] sm:$0x1]  ;;  %v647_v24 = vrot.slane %v640_v15, 7  ;;  %v581_v25 = vrot.slane %v574_v16, 7  ;;  %vm195_vm0 = vcmask 863928  }
  0xcd   : > { %255 = vst.msk [vmem:[#allocation2 + $0x53] sm:$0x40] %vm251_vm6, %v228_v5  ;;  %v559_v26 = vrot.slane %v552_v17, 7  ;;  %v667_v27 = vld [vmem:[#allocation2 + $0x26] sm:$0x1]  ;;  %vm503_vm6 = vcmask 1044472  }
  0xce   : > { %v618_v31 = vld [vmem:[#allocation2 + $0x24] sm:$0x1]  ;;  %v674_v32 = vrot.slane %v667_v27, 7  ;;  %v648_v33 = vsel %vm351_vm8, %v647_v24, %v639_v22  ;;  %v582_v34 = vsel %vm351_vm8, %v581_v25, %v573_v29  ;;  %v596_v38 = vld [vmem:[#allocation2 + $0x23] sm:$0x1]  ;;  %s1984_s5 = smov 103  }
  0xcf   : > { %v560_v35 = vsel %vm351_vm8, %v559_v26, %v551_v30  ;;  %v625_v37 = vrot.slane %v618_v31, 7  ;;  %v2238_v41 = vld [vmem:[#allocation2 + $0x29] sm:$0x1]  ;;  %v2240_v43 = vld [vmem:[#allocation2 + $0x28] sm:$0x1]  ;;  %v649_v45 = vsel %vm353_vm9, %v647_v24, %v648_v33  ;;  %v583_v47 = vsel %vm353_vm9, %v581_v25, %v582_v34 }
  0xd0   : > { %v561_v49 = vsel %vm353_vm9, %v559_v26, %v560_v35  ;;  %v675_v50 = vsel %vm351_vm8, %v674_v32, %v666_v36  ;;  %v603_v55 = vrot.slane %v596_v38, 7  ;;  %v740_v59 = vrot.slane %v2238_v41, 7  ;;  %v2252_v3 = vld [vmem:[#allocation2 + $0x27] sm:$0x1]  ;;  %v732_v24 = vld [vmem:[#allocation2 + $0x11] sm:$0x1] }
  0xd1   : > { %546 = vrot.lane.b32.xlu2 %v545_v18, %s1964_s6  ;;  %v300_v20 = vpop.permute.xlu0 %299  ;;  %v271_v21 = vpop.permute.xlu1 %270  ;;  %v626_v58 = vsel %vm351_vm8, %v625_v37, %v617_v40  ;;  %v718_v61 = vrot.slane %v2240_v43, 7  ;;  %v676_v60 = vsel %vm353_vm9, %v674_v32, %v675_v50  ;;  %v696_v18 = vrot.slane %v2252_v3, 7  ;;  %v710_v30 = vld [vmem:[#allocation2 + $0x10] sm:$0x1]  ;;  %v688_v35 = vld [vmem:[#allocation2 + $0xf] sm:$0x1] }
  0xd2   : > { %524 = vrot.lane.b32.xlu1 %v523_v19, %s1965_s7  ;;  %319 = vst.msk [vmem:[#allocation2 + $0x39] sm:$0xff] %vm313_vm4, %v300_v20  ;;  %v604_v12 = vsel %vm351_vm8, %v603_v55, %v595_v51  ;;  %v627_v16 = vsel %vm353_vm9, %v625_v37, %v626_v58  ;;  %s1985_s6 = smov 105   ;;  %s1986_s7 = smov 87  }
  0xd3   : > { %475 = vrot.lane.b32.xlu0 %v474_v23, %s1966_s8  ;;  %340 = vst.msk [vmem:[#allocation2 + $0x3b] sm:$0x40] %vm337_vm14, %v300_v20 }
  0xd4   : > { %288 = vst.msk [vmem:[#allocation2 + $0x51] sm:$0xff] %vm280_vm2, %v271_v21  ;;  %vm390_vm2 = vcmask 445736  }
  0xd5   : > { %336 = vst.msk [vmem:[#allocation2 + $0x53] sm:$0x40] %vm332_vm7, %v271_v21  ;;  %vm504_vm7 = vcmask 138244  }
  0xd6   : > { %321 = vst.msk [vmem:[#allocation2 + $0x51] sm:$0xff] %vm313_vm4, %v304_v28  ;;  %vm434_vm4 = vcmask 740936  }
  0xd7   : > { %341 = vst.msk [vmem:[#allocation2 + $0x53] sm:$0x40] %vm337_vm14, %v304_v28  ;;  %v605_v28 = vsel %vm353_vm9, %v603_v55, %v604_v12  ;;  %vm593_vm14 = vcmask 724536  }
  0xd9   : > { %v641_v44 = vld [vmem:[#allocation2 + $0x3d] sm:$0x1]  ;;  %v575_v46 = vld [vmem:[#allocation2 + $0x3a] sm:$0x1]  ;;  %v553_v48 = vld [vmem:[#allocation2 + $0x39] sm:$0x1] }
  0xda   : > { %v650_v52 = vrot.slane %v641_v44, 6  ;;  %v584_v39 = vrot.slane %v575_v46, 6  ;;  %v562_v53 = vrot.slane %v553_v48, 6  ;;  %v668_v54 = vld [vmem:[#allocation2 + $0x3e] sm:$0x1]  ;;  %v741_v44 = vsel %vm351_vm8, %v740_v59, %v732_v24 }
  0xdb   : > { %v677_v56 = vrot.slane %v668_v54, 6  ;;  %v619_v57 = vld [vmem:[#allocation2 + $0x3c] sm:$0x1]  ;;  %v597_v2 = vld [vmem:[#allocation2 + $0x3b] sm:$0x1]  ;;  %v742_v54 = vsel %vm353_vm9, %v740_v59, %v741_v44 }
  0xdc   : > { %v651_v62 = vsel %vm356_vm10, %v650_v52, %v649_v45  ;;  %v585_v63 = vsel %vm356_vm10, %v584_v39, %v583_v47  ;;  %v563_v0 = vsel %vm356_vm10, %v562_v53, %v561_v49  ;;  %v628_v1 = vrot.slane %v619_v57, 6  ;;  %v734_v29 = vld [vmem:[#allocation2 + $0x41] sm:$0x1]  ;;  %v712_v31 = vld [vmem:[#allocation2 + $0x40] sm:$0x1] }
  0xdd   : > { %v642_v4 = vld [vmem:[#allocation2 + $0x55] sm:$0x1]  ;;  %v652_v5 = vsel %vm358_vm11, %v650_v52, %v651_v62  ;;  %v576_v6 = vld [vmem:[#allocation2 + $0x52] sm:$0x1]  ;;  %v586_v7 = vsel %vm358_vm11, %v584_v39, %v585_v63  ;;  %v554_v8 = vld [vmem:[#allocation2 + $0x51] sm:$0x1]  ;;  %v564_v42 = vsel %vm358_vm11, %v562_v53, %v563_v0  ;;  %v678_v14 = vsel %vm356_vm10, %v677_v56, %v676_v60 }
  0xde   : > { %v653_v9 = vrot.slane %v642_v4, 5  ;;  %v587_v10 = vrot.slane %v576_v6, 5  ;;  %v565_v11 = vrot.slane %v554_v8, 5  ;;  %v669_v13 = vld [vmem:[#allocation2 + $0x56] sm:$0x1]  ;;  %v606_v17 = vrot.slane %v597_v2, 6 }
  0xdf   : > { %v620_v15 = vld [vmem:[#allocation2 + $0x54] sm:$0x1]  ;;  %v629_v22 = vsel %vm356_vm10, %v628_v1, %v627_v16  ;;  %v598_v23 = vld [vmem:[#allocation2 + $0x53] sm:$0x1]  ;;  %v680_v32 = vrot.slane %v669_v13, 5  ;;  %v679_v37 = vsel %vm358_vm11, %v677_v56, %v678_v14  ;;  %v743_v46 = vrot.slane %v734_v29, 6 }
  0xe0   : > { %v654_v19 = vsel %vm361_vm12, %v653_v9, %v652_v5  ;;  %v588_v20 = vsel %vm361_vm12, %v587_v10, %v586_v7  ;;  %v566_v21 = vsel %vm361_vm12, %v565_v11, %v564_v42  ;;  %v631_v33 = vrot.slane %v620_v15, 5  ;;  %v690_v36 = vld [vmem:[#allocation2 + $0x3f] sm:$0x1]  ;;  %v735_v53 = vld [vmem:[#allocation2 + $0x59] sm:$0x1] }
  0xe1   : > { %v655_v25 = vsel %vm363_vm13, %v653_v9, %v654_v19  ;;  %v589_v26 = vsel %vm363_vm13, %v587_v10, %v588_v20  ;;  %v567_v27 = vsel %vm363_vm13, %v565_v11, %v566_v21  ;;  %v607_v34 = vsel %vm356_vm10, %v606_v17, %v605_v28  ;;  %v713_v55 = vld [vmem:[#allocation2 + $0x58] sm:$0x1]  ;;  %v691_v62 = vld [vmem:[#allocation2 + $0x57] sm:$0x1] }
  0xe2   : > { %656 = vrot.lane.b32.xlu2 %v655_v25, %s1967_s9  ;;  %590 = vrot.lane.b32.xlu1 %v589_v26, %s1968_s10  ;;  %v630_v38 = vsel %vm358_vm11, %v628_v1, %v629_v22  ;;  %v609_v40 = vrot.slane %v598_v23, 5  ;;  %v608_v45 = vsel %vm358_vm11, %v606_v17, %v607_v34  ;;  %v719_v47 = vsel %vm351_vm8, %v718_v61, %v710_v30  ;;  %s1987_s9 = smov 99   ;;  %s1988_s10 = smov 101  }
  0xe3   : > { %568 = vrot.lane.b32.xlu0 %v567_v27, %s1969_s11  ;;  %v721_v48 = vrot.slane %v712_v31, 6  ;;  %v697_v49 = vsel %vm351_vm8, %v696_v18, %v688_v35  ;;  %v699_v50 = vrot.slane %v690_v36, 6  ;;  %v681_v51 = vsel %vm361_vm12, %v680_v32, %v679_v37  ;;  %s1992_s11 = smov 85  }
  0xe4   : > { %v632_v52 = vsel %vm361_vm12, %v631_v33, %v630_v38  ;;  %v610_v39 = vsel %vm361_vm12, %v609_v40, %v608_v45  ;;  %v720_v56 = vsel %vm353_vm9, %v718_v61, %v719_v47  ;;  %v744_v57 = vsel %vm356_vm10, %v743_v46, %v742_v54 }
  0xe5   : > { %v722_v58 = vsel %vm356_vm10, %v721_v48, %v720_v56  ;;  %v698_v63 = vsel %vm353_vm9, %v696_v18, %v697_v49  ;;  %v682_v0 = vsel %vm363_vm13, %v680_v32, %v681_v51  ;;  %v633_v1 = vsel %vm363_vm13, %v631_v33, %v632_v52 }
  0xe6   : > { %v700_v41 = vsel %vm356_vm10, %v699_v50, %v698_v63  ;;  %v611_v43 = vsel %vm363_vm13, %v609_v40, %v610_v39  ;;  %v746_v59 = vrot.slane %v735_v53, 5  ;;  %v724_v61 = vrot.slane %v713_v55, 5  ;;  %vm505_vm10 = vmor %vm504_vm7, %vm503_vm6 }
  0xe7   : > { %v745_v2 = vsel %vm358_vm11, %v743_v46, %v744_v57  ;;  %v723_v3 = vsel %vm358_vm11, %v721_v48, %v722_v58  ;;  %v702_v4 = vrot.slane %v691_v62, 5  ;;  %v701_v5 = vsel %vm358_vm11, %v699_v50, %v700_v41 }
  0xe8   : > { %v747_v6 = vsel %vm361_vm12, %v746_v59, %v745_v2  ;;  %v725_v7 = vsel %vm361_vm12, %v724_v61, %v723_v3  ;;  %v1976_v10 = vmov 0.0   ;;  %vm500_vm8 = vcmask 1039360  }
  0xe9   : > { %v703_v8 = vsel %vm361_vm12, %v702_v4, %v701_v5  ;;  %v748_v42 = vsel %vm363_vm13, %v746_v59, %v747_v6  ;;  %v726_v60 = vsel %vm363_vm13, %v724_v61, %v725_v7  ;;  %194 = vst.msk [vmem:[#allocation3] sm:$0xf] %vm193_vm15, %v1976_v10  ;;  %vm478_vm9 = vcmask 1036136   ;;  %v756_v7 = vld [vmem:[%s2466_s1] sm:$0xff] }
  0xea   : > { %683 = vrot.lane.b32.xlu2 %v682_v0, %s1970_s12  ;;  %634 = vrot.lane.b32.xlu1 %v633_v1, %s1971_s18  ;;  %v704_v9 = vsel %vm363_vm13, %v702_v4, %v703_v8  ;;  %196 = vst.msk [vmem:[#allocation3 + $0x8] sm:$0xf] %vm195_vm0, %v1976_v10  ;;  %vm527_vm11 = vcmask 281736   ;;  %vm549_vm12 = vcmask 429336   ;;  %vm571_vm13 = vcmask 576936   ;;  %s1993_s12 = smov 81  }
  0xeb   : > { %612 = vrot.lane.b32.xlu0 %v611_v43, %s1972_s19  ;;  %vm662_vm15 = vcmask 1044456   ;;  %vm663_vm0 = vcmask 121860   ;;  %vm708_vm6 = vcmask 412936   ;;  %vm730_vm7 = vcmask 560536  }
  0xf2   : > { %749 = vrot.lane.b32.xlu2 %v748_v42, %s1973_s21  ;;  %727 = vrot.lane.b32.xlu1 %v726_v60, %s1974_s23  ;;  %s1806_s21 = sshll.u32 %s2477_s16, 4 }
  0xf3   : > { %705 = vrot.lane.b32.xlu0 %v704_v9, %s1975_s24  ;;  %v1741_v9 = vld [vmem:[%s2466_s1 + $0x8] sm:$0xff] }
 0x11b   : > { %v410_v11 = vpop.permute.xlu2 %409 }
 0x123   : > { %v454_v16 = vpop.permute.xlu2 %453 }
 0x12b   : > { %v547_v21 = vpop.permute.xlu2 %546 }
 0x134   : > { %v388_v12 = vpop.permute.xlu1 %387 }
 0x135   : > { %v366_v13 = vpop.permute.xlu0 %365 }
 0x136   : > { %369 = vst.msk [vmem:[#allocation3] sm:$0xf] %vm368_vm1, %v366_v13  ;;  %vm615_vm1 = vcmask 872136  }
 0x137   : > { %391 = vst.msk [vmem:[#allocation3] sm:$0xf] %vm390_vm2, %v388_v12  ;;  %vm659_vm2 = vcmask 1022976  }
 0x138   : > { %413 = vst.msk [vmem:[#allocation3] sm:$0xf] %vm412_vm3, %v410_v11  ;;  %vm637_vm3 = vcmask 1019736  }
 0x13c   : > { %v498_v15 = vpop.permute.xlu1 %497  ;;  %v657_v22 = vpop.permute.xlu2 %656 }
 0x13d   : > { %v432_v14 = vpop.permute.xlu0 %431  ;;  %v499_v17 = vrot.slane %v498_v15, 4  ;;  %v658_v25 = vrot.slane %v657_v22, 4 }
 0x13e   : > { %435 = vst.msk [vmem:[#allocation3] sm:$0xf] %vm434_vm4, %v432_v14  ;;  %vm664_vm4 = vmor %vm663_vm0, %vm662_vm15  ;;  %vm1311_vm15 = vcmask 752640   ;;  %vm1404_vm0 = vcmask 744448  }
 0x13f   : > { %457 = vst.msk [vmem:[#allocation3] sm:$0xf] %vm456_vm5, %v454_v16  ;;  %v501_v19 = vsel %vm500_vm8, %v499_v17, %v498_v15  ;;  %vm686_vm5 = vcmask 265336   ;;  %v660_v29 = vsel %vm659_vm2, %v658_v25, %v657_v22  ;;  %v1754_v15 = vld [vmem:[%s2466_s1 + $0x10] sm:$0xff]  ;;  %vm1585_vm2 = vcmask 130048  }
 0x144   : > { %v525_v20 = vpop.permute.xlu1 %524  ;;  %v684_v28 = vpop.permute.xlu2 %683 }
 0x145   : > { %v476_v18 = vpop.permute.xlu0 %475 }
 0x146   : > { %479 = vst.msk [vmem:[#allocation3] sm:$0xf] %vm478_vm9, %v476_v18  ;;  %vm752_vm9 = vcmask 708136  }
 0x147   : > { %506 = vst.msk [vmem:[#allocation3] sm:$0xff] %vm505_vm10, %v501_v19  ;;  %vm779_vm10 = vcmask 1043456  }
 0x148   : > { %528 = vst.msk [vmem:[#allocation3 + $0x4] sm:$0xf] %vm527_vm11, %v525_v20  ;;  %vm775_vm11 = vcmask 31744   ;;  %v1761_v20 = vld [vmem:[%s2466_s1 + $0x18] sm:$0xff] }
 0x149   : > { %550 = vst.msk [vmem:[#allocation3 + $0x4] sm:$0xf] %vm549_vm12, %v547_v21  ;;  %vm939_vm12 = vcmask 1031168  }
 0x14c   : > { %v750_v33 = vpop.permute.xlu2 %749 }
 0x154   : > { %v591_v23 = vpop.permute.xlu1 %590 }
 0x155   : > { %v569_v24 = vpop.permute.xlu0 %568 }
 0x156   : > { %572 = vst.msk [vmem:[#allocation3 + $0x4] sm:$0xf] %vm571_vm13, %v569_v24  ;;  %vm1125_vm13 = vcmask 891904  }
 0x157   : > { %594 = vst.msk [vmem:[#allocation3 + $0x4] sm:$0xf] %vm593_vm14, %v591_v23  ;;  %vm1218_vm14 = vcmask 883712  }
 0x15c   : > { %v635_v26 = vpop.permute.xlu1 %634 }
 0x15d   : > { %v613_v27 = vpop.permute.xlu0 %612 }
 0x15e   : > { %616 = vst.msk [vmem:[#allocation3 + $0x4] sm:$0xf] %vm615_vm1, %v613_v27  ;;  %vm1497_vm1 = vcmask 736256  }
 0x15f   : > { %638 = vst.msk [vmem:[#allocation3 + $0x4] sm:$0xf] %vm637_vm3, %v635_v26  ;;  %v1768_v26 = vld [vmem:[%s2466_s1 + $0x20] sm:$0xff]  ;;  %vm1590_vm3 = vcmask 261248  }
 0x160   : > { %665 = vst.msk [vmem:[#allocation3 + $0x4] sm:$0xff] %vm664_vm4, %v660_v29  ;;  %vm1595_vm4 = vcmask 392448  }
 0x161   : > { %687 = vst.msk [vmem:[#allocation3 + $0x8] sm:$0xf] %vm686_vm5, %v684_v28  ;;  %vm1600_vm5 = vcmask 523648  }
 0x164   : > { %v728_v30 = vpop.permute.xlu1 %727 }
 0x165   : > { %v706_v31 = vpop.permute.xlu0 %705 }
 0x166   : > { %709 = vst.msk [vmem:[#allocation3 + $0x8] sm:$0xf] %vm708_vm6, %v706_v31  ;;  %v1572_v31 = vld [vmem:[%s2467_s2] sm:$0xff]  ;;  %vm1605_vm6 = vcmask 654848  }
 0x167   : > { %v2309_v32 = vld [vmem:[#allocation3] sm:$0xff]  ;;  %731 = vst.msk [vmem:[#allocation3 + $0x8] sm:$0xf] %vm730_vm7, %v728_v30  ;;  %vm1610_vm7 = vcmask 786048  }
 0x168   : > { %761 = vst [vmem:[#allocation1] ss:$2 sm:$0xff] %v2309_v32 }
 0x169   : > { %753 = vst.msk [vmem:[#allocation3 + $0x8] sm:$0xf] %vm752_vm9, %v750_v33  ;;  %vm1617_vm9 = vcmask 793600  }
 0x16f   : > { %v765_v34 = vld.sshfl [vmem:[#allocation1 + $0x8] sm:$0xff pattern:$0x75316420]  ;;  %v764_v35 = vld.sshfl [vmem:[#allocation1] sm:$0xff pattern:$0x75316420] }
 0x170   : > { %v755_v36 = vld [vmem:[#allocation3 + $0x8] sm:$0xf]  ;;  %769 = vrot.lane.b32.xlu2 %v765_v34, %s1958_s28  ;;  %767 = vrot.lane.b32.xlu1 %v764_v35, %s1958_s28  ;;  %846 = vst [vmem:[#allocation1] ss:$2 sm:$0xff] %v2309_v32  ;;  %v1775_v35 = vld [vmem:[%s2466_s1 + $0x28] sm:$0xff] }
 0x171   : > { %763 = vst [vmem:[#allocation1 + $0x10] ss:$2 sm:$0xff] %v755_v36  ;;  %v922_v44 = vld [vmem:[#allocation3 + $0x8] sm:$0xf] }
 0x172   : > { %v1015_v48 = vld [vmem:[#allocation3 + $0x8] sm:$0xf] }
 0x173   : > { %v1108_v52 = vld [vmem:[#allocation3 + $0x8] sm:$0xf] }
 0x174   : > { %v1201_v55 = vld [vmem:[#allocation3 + $0x8] sm:$0xf] }
 0x175   : > { %v1294_v62 = vld [vmem:[#allocation3 + $0x8] sm:$0xf] }
 0x176   : > { %v1387_v41 = vld [vmem:[#allocation3 + $0x8] sm:$0xf] }
 0x177   : > { %v849_v38 = vld.sshfl [vmem:[#allocation1] sm:$0xff pattern:$0x75316420]  ;;  %v2315_v40 = vld.sshfl [vmem:[#allocation1 + $0x8] sm:$0xff pattern:$0x75316420] }
 0x178   : > { %v766_v37 = vld.sshfl [vmem:[#allocation1 + $0x10] sm:$0xff pattern:$0x75316420]  ;;  %1748 = vmatpush.msk.msra.mxu3 %vm779_vm10, %v849_v38  ;;  %927 = vst [vmem:[#allocation1] ss:$2 sm:$0xff] %v2309_v32 }
 0x179   : > { %771 = vrot.lane.b32.xlu0 %v766_v37, %s1958_s28  ;;  %848 = vst [vmem:[#allocation1 + $0x10] ss:$2 sm:$0xff] %v755_v36  ;;  %v1480_v2 = vld [vmem:[#allocation3 + $0x8] sm:$0xf]  ;;  %s1981_s28 = smov 90   ;;  %1749 = vmatmul.msk.f32.vlgmr.msra.gmra.mxu3 %vm775_vm11, %v756_v7 }
 0x17f   : > { %v931_v45 = vld.sshfl [vmem:[#allocation1 + $0x8] sm:$0xff pattern:$0x75316420]  ;;  %v930_v46 = vld.sshfl [vmem:[#allocation1] sm:$0xff pattern:$0x75316420] }
 0x180   : > { %935 = vrot.lane.b32.xlu1 %v931_v45, %s1977_s25  ;;  %1020 = vst [vmem:[#allocation1] ss:$2 sm:$0xff] %v2309_v32  ;;  %v2321_v47 = vld.sshfl [vmem:[#allocation1 + $0x10] sm:$0xff pattern:$0x75316420] }
 0x181   : > { %933 = vrot.lane.b32.xlu0 %v930_v46, %s1977_s25  ;;  %929 = vst [vmem:[#allocation1 + $0x10] ss:$2 sm:$0xff] %v922_v44  ;;  %v1782_v45 = vld [vmem:[%s2466_s1 + $0x30] sm:$0xff] }
 0x187   : > { %v1024_v49 = vld.sshfl [vmem:[#allocation1 + $0x8] sm:$0xff pattern:$0x75316420]  ;;  %v1023_v50 = vld.sshfl [vmem:[#allocation1] sm:$0xff pattern:$0x75316420] }
 0x188   : > { %v932_v51 = vld.sshfl [vmem:[#allocation1 + $0x10] sm:$0xff pattern:$0x75316420]  ;;  %1113 = vst [vmem:[#allocation1] ss:$2 sm:$0xff] %v2309_v32 }
 0x189   : > { %1028 = vrot.lane.b32.xlu0 %v1024_v49, %s1978_s26  ;;  %937 = vrot.lane.b32.xlu2 %v932_v51, %s1977_s25  ;;  %1022 = vst [vmem:[#allocation1 + $0x10] ss:$2 sm:$0xff] %v1015_v48  ;;  %v1789_v51 = vld [vmem:[%s2466_s1 + $0x38] sm:$0xff]  ;;  %s2432_s25 = scalar_lea.vmem %s2468_s3, %s1806_s21 }
 0x18f   : > { %v1117_v39 = vld.sshfl [vmem:[#allocation1 + $0x8] sm:$0xff pattern:$0x75316420]  ;;  %v1116_v53 = vld.sshfl [vmem:[#allocation1] sm:$0xff pattern:$0x75316420] }
 0x190   : > { %v1025_v54 = vld.sshfl [vmem:[#allocation1 + $0x10] sm:$0xff pattern:$0x75316420]  ;;  %1206 = vst [vmem:[#allocation1] ss:$2 sm:$0xff] %v2309_v32 }
 0x191   : > { %1026 = vrot.lane.b32.xlu2 %v1023_v50, %s1978_s26  ;;  %1030 = vrot.lane.b32.xlu1 %v1025_v54, %s1978_s26  ;;  %1115 = vst [vmem:[#allocation1 + $0x10] ss:$2 sm:$0xff] %v1108_v52 }
 0x197   : > { %v1209_v56 = vld.sshfl [vmem:[#allocation1] sm:$0xff pattern:$0x75316420]  ;;  %v1210_v57 = vld.sshfl [vmem:[#allocation1 + $0x8] sm:$0xff pattern:$0x75316420] }
 0x198   : > { %1299 = vst [vmem:[#allocation1] ss:$2 sm:$0xff] %v2309_v32  ;;  %v1118_v58 = vld.sshfl [vmem:[#allocation1 + $0x10] sm:$0xff pattern:$0x75316420] }
 0x199   : > { %1121 = vrot.lane.b32.xlu2 %v1117_v39, %s1966_s8  ;;  %1119 = vrot.lane.b32.xlu1 %v1116_v53, %s1966_s8  ;;  %1208 = vst [vmem:[#allocation1 + $0x10] ss:$2 sm:$0xff] %v1201_v55 }
 0x19a   : > { %1123 = vrot.lane.b32.xlu0 %v1118_v58, %s1966_s8 }
 0x19f   : > { %v1302_v63 = vld.sshfl [vmem:[#allocation1] sm:$0xff pattern:$0x75316420]  ;;  %v1303_v0 = vld.sshfl [vmem:[#allocation1 + $0x8] sm:$0xff pattern:$0x75316420] }
 0x1a0   : > { %1392 = vst [vmem:[#allocation1] ss:$2 sm:$0xff] %v2309_v32  ;;  %v1211_v1 = vld.sshfl [vmem:[#allocation1 + $0x10] sm:$0xff pattern:$0x75316420] }
 0x1a1   : > { %1305 = vrot.lane.b32.xlu2 %v1302_v63, %s1979_s15  ;;  %1214 = vrot.lane.b32.xlu1 %v1210_v57, %s1980_s27  ;;  %1301 = vst [vmem:[#allocation1 + $0x10] ss:$2 sm:$0xff] %v1294_v62  ;;  %v1796_v57 = vld [vmem:[%s2466_s1 + $0x40] sm:$0xff] }
 0x1a2   : > { %1212 = vrot.lane.b32.xlu0 %v1209_v56, %s1980_s27 }
 0x1a7   : > { %v1396_v43 = vld.sshfl [vmem:[#allocation1 + $0x8] sm:$0xff pattern:$0x75316420]  ;;  %v1395_v59 = vld.sshfl [vmem:[#allocation1] sm:$0xff pattern:$0x75316420] }
 0x1a8   : > { %v1304_v61 = vld.sshfl [vmem:[#allocation1 + $0x10] sm:$0xff pattern:$0x75316420]  ;;  %1485 = vst [vmem:[#allocation1] ss:$2 sm:$0xff] %v2309_v32  ;;  %v1982_v32 = vmov 0  }
 0x1a9   : > { %1216 = vrot.lane.b32.xlu1 %v1211_v1, %s1980_s27  ;;  %1309 = vrot.lane.b32.xlu2 %v1304_v61, %s1979_s15  ;;  %1394 = vst [vmem:[#allocation1 + $0x10] ss:$2 sm:$0xff] %v1387_v41 }
 0x1aa   : > { %1307 = vrot.lane.b32.xlu0 %v1303_v0, %s1979_s15 }
 0x1ab   : > { %1887 = vset.pattern.permute.xlu0 %v1982_v32 }
 0x1af   : > { %v1489_v4 = vld.sshfl [vmem:[#allocation1 + $0x8] sm:$0xff pattern:$0x75316420]  ;;  %v1488_v5 = vld.sshfl [vmem:[#allocation1] sm:$0xff pattern:$0x75316420] }
 0x1b0   : > { %v1397_v3 = vld.sshfl [vmem:[#allocation1 + $0x10] sm:$0xff pattern:$0x75316420] }
 0x1b1   : > { %1398 = vrot.lane.b32.xlu2 %v1395_v59, %s1962_s4  ;;  %1402 = vrot.lane.b32.xlu1 %v1397_v3, %s1962_s4  ;;  %1487 = vst [vmem:[#allocation1 + $0x10] ss:$2 sm:$0xff] %v1480_v2 }
 0x1b2   : > { %1400 = vrot.lane.b32.xlu0 %v1396_v43, %s1962_s4 }
 0x1b8   : > { %v1490_v6 = vld.sshfl [vmem:[#allocation1 + $0x10] sm:$0xff pattern:$0x75316420] }
 0x1b9   : > { %1493 = vrot.lane.b32.xlu2 %v1489_v4, %s1981_s28  ;;  %1491 = vrot.lane.b32.xlu1 %v1488_v5, %s1981_s28 }
 0x1ba   : > { %1495 = vrot.lane.b32.xlu0 %v1490_v6, %s1981_s28 }
 0x1c2   : > { %1575 = vperm.xlu0 %1887, %v1572_v31  }
 0x1ca   : > { %v770_v8 = vpop.permute.xlu2 %769 }
 0x1e2   : > { %v768_v42 = vpop.permute.xlu1 %767 }
 0x1e3   : > { %v773_v60 = vsel %vm500_vm8, %v768_v42, %v770_v8  ;;  %v938_v10 = vpop.permute.xlu2 %937 }
 0x1e4   : > { %1742 = vmatpush.msk.msra.mxu0 %vm779_vm10, %v773_v60 }
 0x1e5   : > { %1743 = vmatmul.msk.f32.vlgmr.msra.gmra.mxu0 %vm775_vm11, %v1741_v9 }
 0x1e6   : > { %1750 = vmatpush.msk.msrb.mxu0 %vm779_vm10, %v2315_v40 }
 0x1e8   : > { %1759 = vmatpush.msk.msra.mxu0 %vm779_vm10, %v938_v10 }
 0x1eb   : > { %v772_v11 = vpop.permute.xlu0 %771  ;;  %v1027_v18 = vpop.permute.xlu2 %1026 }
 0x1ec   : > { %1746 = vmatpush.msk.msra.mxu2 %vm779_vm10, %v772_v11  ;;  %v774_v12 = vsel %vm500_vm8, %v770_v8, %v772_v11  ;;  %vm1032_vm8 = vcmask 900096  }
 0x1ed   : > { %1744 = vmatpush.msk.msra.mxu1 %vm779_vm10, %v774_v12  ;;  %1747 = vmatmul.msk.f32.vlgmr.msra.gmra.mxu2 %vm775_vm11, %v1741_v9 }
 0x1ee   : > { %1751 = vmatmul.msk.f32.vlgmr.msrb.gmra.mxu0 %vm775_vm11, %v756_v7  ;;  %1745 = vmatmul.msk.f32.vlgmr.msra.gmra.mxu1 %vm775_vm11, %v1741_v9 }
 0x1ef   : > { %1752 = vmatpush.msk.msrb.mxu1 %vm779_vm10, %v2321_v47 }
 0x1f2   : > { %v936_v13 = vpop.permute.xlu1 %935 }
 0x1f3   : > { %v934_v14 = vpop.permute.xlu0 %933  ;;  %v941_v17 = vsel %vm939_vm12, %v936_v13, %v938_v10  ;;  %v1122_v22 = vpop.permute.xlu2 %1121 }
 0x1f4   : > { %v940_v16 = vsel %vm939_vm12, %v934_v14, %v936_v13  ;;  %1757 = vmatpush.msk.msrb.mxu3 %vm779_vm10, %v941_v17  ;;  %vm1652_vm12 = vcmask 678912  }
 0x1f5   : > { %1755 = vmatpush.msk.msrb.mxu2 %vm779_vm10, %v940_v16  ;;  %1758 = vmatmul.msk.f32.vlgmr.msrb.gmra.mxu3 %vm775_vm11, %v1754_v15 }
 0x1f6   : > { %1753 = vmatmul.msk.f32.vlgmr.msrb.gmra.mxu1 %vm775_vm11, %v756_v7  ;;  %1756 = vmatmul.msk.f32.vlgmr.msrb.gmra.mxu2 %vm775_vm11, %v1754_v15 }
 0x1f7   : > { %1760 = vmatmul.msk.f32.vlgmr.msra.gmra.mxu0 %vm775_vm11, %v1754_v15 }
 0x1fb   : > { %v1029_v19 = vpop.permute.xlu0 %1028  ;;  %v1306_v29 = vpop.permute.xlu2 %1305 }
 0x1fc   : > { %v1033_v21 = vsel %vm1032_vm8, %v1027_v18, %v1029_v19  ;;  %v878_v43 = vpop.f32.mrf.mxu3 }
 0x1fd   : > { %1762 = vmatpush.msk.msra.mxu1 %vm779_vm10, %v1033_v21 }
 0x1fe   : > { %1763 = vmatmul.msk.f32.vlgmr.msra.gmra.mxu1 %vm775_vm11, %v1761_v20 }
 0x203   : > { %v1031_v23 = vpop.permute.xlu1 %1030  ;;  %v1310_v37 = vpop.permute.xlu2 %1309 }
 0x204   : > { %v1034_v24 = vsel %vm1032_vm8, %v1029_v19, %v1031_v23  ;;  %1766 = vmatpush.msk.msra.mxu3 %vm779_vm10, %v1031_v23 }
 0x205   : > { %1764 = vmatpush.msk.msra.mxu2 %vm779_vm10, %v1034_v24  ;;  %1767 = vmatmul.msk.f32.vlgmr.msra.gmra.mxu3 %vm775_vm11, %v1761_v20 }
 0x206   : > { %1765 = vmatmul.msk.f32.vlgmr.msra.gmra.mxu2 %vm775_vm11, %v1761_v20 }
 0x20b   : > { %v1120_v25 = vpop.permute.xlu1 %1119  ;;  %v1399_v48 = vpop.permute.xlu2 %1398 }
 0x20c   : > { %v1126_v27 = vsel %vm1125_vm13, %v1120_v25, %v1122_v22  ;;  %v1124_v28 = vpop.permute.xlu0 %1123 }
 0x20d   : > { %v1127_v30 = vsel %vm1125_vm13, %v1122_v22, %v1124_v28  ;;  %1773 = vmatpush.msk.msrb.mxu2 %vm779_vm10, %v1124_v28  ;;  %1769 = vmatpush.msk.msrb.mxu0 %vm779_vm10, %v1126_v27 }
 0x20e   : > { %1771 = vmatpush.msk.msrb.mxu1 %vm779_vm10, %v1127_v30  ;;  %1770 = vmatmul.msk.f32.vlgmr.msrb.gmra.mxu0 %vm775_vm11, %v1768_v26 }
 0x20f   : > { %1772 = vmatmul.msk.f32.vlgmr.msrb.gmra.mxu1 %vm775_vm11, %v1768_v26  ;;  %1774 = vmatmul.msk.f32.vlgmr.msrb.gmra.mxu2 %vm775_vm11, %v1768_v26 }
 0x213   : > { %v1215_v33 = vpop.permute.xlu1 %1214  ;;  %v1494_v53 = vpop.permute.xlu2 %1493 }
 0x214   : > { %v1213_v34 = vpop.permute.xlu0 %1212 }
 0x215   : > { %v1219_v36 = vsel %vm1218_vm14, %v1213_v34, %v1215_v33 }
 0x216   : > { %1776 = vmatpush.msk.msrb.mxu3 %vm779_vm10, %v1219_v36 }
 0x217   : > { %1777 = vmatmul.msk.f32.vlgmr.msrb.gmra.mxu3 %vm775_vm11, %v1775_v35 }
 0x21b   : > { %v1217_v38 = vpop.permute.xlu1 %1216 }
 0x21c   : > { %v1308_v40 = vpop.permute.xlu0 %1307  ;;  %v1220_v44 = vsel %vm1218_vm14, %v1215_v33, %v1217_v38  ;;  %1780 = vmatpush.msk.msra.mxu1 %vm779_vm10, %v1217_v38 }
 0x21d   : > { %v1312_v46 = vsel %vm1311_vm15, %v1306_v29, %v1308_v40  ;;  %v1313_v47 = vsel %vm1311_vm15, %v1308_v40, %v1310_v37  ;;  %1778 = vmatpush.msk.msra.mxu0 %vm779_vm10, %v1220_v44  ;;  %1781 = vmatmul.msk.f32.vlgmr.msra.gmra.mxu1 %vm775_vm11, %v1775_v35 }
 0x21e   : > { %1783 = vmatpush.msk.msra.mxu2 %vm779_vm10, %v1312_v46  ;;  %1785 = vmatpush.msk.msra.mxu3 %vm779_vm10, %v1313_v47 }
 0x21f   : > { %1779 = vmatmul.msk.f32.vlgmr.msra.gmra.mxu0 %vm775_vm11, %v1775_v35  ;;  %1784 = vmatmul.msk.f32.vlgmr.msra.gmra.mxu2 %vm775_vm11, %v1782_v45 }
 0x220   : > { %1786 = vmatmul.msk.f32.vlgmr.msra.gmra.mxu3 %vm775_vm11, %v1782_v45  ;;  %1787 = vmatpush.msk.msrb.mxu0 %vm779_vm10, %v1310_v37 }
 0x223   : > { %v1403_v49 = vpop.permute.xlu1 %1402 }
 0x224   : > { %v1401_v50 = vpop.permute.xlu0 %1400  ;;  %1794 = vmatpush.msk.msrb.mxu3 %vm779_vm10, %v1403_v49 }
 0x225   : > { %v1405_v52 = vsel %vm1404_vm0, %v1399_v48, %v1401_v50  ;;  %v1406_v39 = vsel %vm1404_vm0, %v1401_v50, %v1403_v49 }
 0x226   : > { %1790 = vmatpush.msk.msrb.mxu1 %vm779_vm10, %v1405_v52  ;;  %1792 = vmatpush.msk.msrb.mxu2 %vm779_vm10, %v1406_v39 }
 0x227   : > { %1788 = vmatmul.msk.f32.vlgmr.msrb.gmra.mxu0 %vm775_vm11, %v1782_v45  ;;  %1791 = vmatmul.msk.f32.vlgmr.msrb.gmra.mxu1 %vm775_vm11, %v1789_v51 }
 0x228   : > { %1793 = vmatmul.msk.f32.vlgmr.msrb.gmra.mxu2 %vm775_vm11, %v1789_v51  ;;  %1795 = vmatmul.msk.f32.vlgmr.msrb.gmra.mxu3 %vm775_vm11, %v1789_v51 }
 0x22b   : > { %v1492_v54 = vpop.permute.xlu1 %1491 }
 0x22c   : > { %v1498_v55 = vsel %vm1497_vm1, %v1492_v54, %v1494_v53  ;;  %v1496_v56 = vpop.permute.xlu0 %1495 }
 0x22d   : > { %v1499_v58 = vsel %vm1497_vm1, %v1494_v53, %v1496_v56  ;;  %1801 = vmatpush.msk.msra.mxu2 %vm779_vm10, %v1496_v56  ;;  %1797 = vmatpush.msk.msra.mxu0 %vm779_vm10, %v1498_v55 }
 0x22e   : > { %1799 = vmatpush.msk.msra.mxu1 %vm779_vm10, %v1499_v58  ;;  %vm1620_vm10 = vcmask 917248  }
 0x22f   : > { %1798 = vmatmul.msk.f32.vlgmr.msra.gmra.mxu0 %vm775_vm11, %v1796_v57  ;;  %1800 = vmatmul.msk.f32.vlgmr.msra.gmra.mxu1 %vm775_vm11, %v1796_v57 }
 0x230   : > { %1802 = vmatmul.msk.f32.vlgmr.msra.gmra.mxu2 %vm775_vm11, %v1796_v57  ;;  %vm1625_vm11 = vcmask 1048448  }
 0x234   : > { %v1576_v26 = vpop.permute.xlu0 %1575 }
 0x262   : > { %v803_v62 = vpop.f32.mrf.mxu0 }
 0x263   : > { %v879_v8 = vadd.f32 %v878_v43, %v803_v62 }
 0x26b   : > { %v823_v63 = vpop.f32.mrf.mxu1  ;;  %v898_v1 = vpop.f32.mrf.mxu0 }
 0x26c   : > { %v899_v11 = vadd.f32 %v898_v1, %v823_v63 }
 0x270   : > { %v843_v0 = vpop.f32.mrf.mxu2 }
 0x273   : > { %v918_v41 = vpop.f32.mrf.mxu1 }
 0x274   : > { %v1008_v61 = vpop.f32.mrf.mxu0  ;;  %v919_v36 = vadd.f32 %v918_v41, %v843_v0 }
 0x276   : > { %v1013_v37 = vadd.f32 %v1008_v61, %v919_v36 }
 0x278   : > { %v988_v3 = vpop.f32.mrf.mxu3 }
 0x279   : > { %v968_v59 = vpop.f32.mrf.mxu2  ;;  %v1012_v15 = vadd.f32 %v988_v3, %v899_v11 }
 0x27a   : > { %v1011_v10 = vadd.f32 %v968_v59, %v879_v8 }
 0x27b   : > { %v1061_v2 = vpop.f32.mrf.mxu1 }
 0x27c   : > { %v1104_v13 = vadd.f32 %v1061_v2, %v1011_v10 }
 0x288   : > { %v1101_v7 = vpop.f32.mrf.mxu3 }
 0x289   : > { %v1081_v4 = vpop.f32.mrf.mxu2  ;;  %v1106_v38 = vadd.f32 %v1101_v7, %v1013_v37 }
 0x28a   : > { %v1105_v18 = vadd.f32 %v1081_v4, %v1012_v15 }
 0x28b   : > { %v1154_v5 = vpop.f32.mrf.mxu0 }
 0x28c   : > { %v1174_v6 = vpop.f32.mrf.mxu1  ;;  %v1197_v16 = vadd.f32 %v1154_v5, %v1104_v13 }
 0x28d   : > { %v1198_v22 = vadd.f32 %v1174_v6, %v1105_v18 }
 0x292   : > { %v1194_v42 = vpop.f32.mrf.mxu2 }
 0x293   : > { %v1199_v40 = vadd.f32 %v1194_v42, %v1106_v38 }
 0x29a   : > { %v1287_v60 = vpop.f32.mrf.mxu1  ;;  %v1247_v12 = vpop.f32.mrf.mxu3 }
 0x29b   : > { %v1290_v19 = vadd.f32 %v1247_v12, %v1197_v16  ;;  %v1292_v44 = vadd.f32 %v1287_v60, %v1199_v40 }
 0x29c   : > { %v1267_v9 = vpop.f32.mrf.mxu0 }
 0x29d   : > { %v1291_v24 = vadd.f32 %v1267_v9, %v1198_v22 }
 0x2a2   : > { %v1340_v14 = vpop.f32.mrf.mxu2 }
 0x2a3   : > { %v1383_v21 = vadd.f32 %v1340_v14, %v1290_v19  ;;  %v1360_v23 = vpop.f32.mrf.mxu3 }
 0x2a4   : > { %v1380_v17 = vpop.f32.mrf.mxu0  ;;  %v1433_v20 = vpop.f32.mrf.mxu1  ;;  %v1384_v29 = vadd.f32 %v1360_v23, %v1291_v24 }
 0x2a5   : > { %v1476_v25 = vadd.f32 %v1433_v20, %v1383_v21  ;;  %v1385_v46 = vadd.f32 %v1380_v17, %v1292_v44 }
 0x2ab   : > { %v1453_v27 = vpop.f32.mrf.mxu2  ;;  %v1473_v45 = vpop.f32.mrf.mxu3 }
 0x2ac   : > { %v1526_v28 = vpop.f32.mrf.mxu0  ;;  %v1477_v31 = vadd.f32 %v1453_v27, %v1384_v29  ;;  %v1546_v33 = vpop.f32.mrf.mxu1  ;;  %v1478_v48 = vadd.f32 %v1473_v45, %v1385_v46 }
 0x2ad   : > { %v1569_v30 = vadd.f32 %v1526_v28, %v1476_v25 }
 0x2ae   : > { %v1570_v34 = vadd.f32 %v1546_v33, %v1477_v31 }
 0x2af   : > { %v1578_v32 = vadd.f32 %v1576_v26, %v1569_v30 }
 0x2b0   : > { %v1579_v35 = vadd.f32 %v1576_v26, %v1570_v34 }
 0x2b1   : > { %1613 = vrot.lane.b32.xlu0 %v1578_v32, %s1983_s30  ;;  %1587 = vrot.lane.b32.xlu2 %v1578_v32, %s1971_s18  ;;  %s1989_s18 = smov 83  }
 0x2b2   : > { %1582 = vrot.lane.b32.xlu1 %v1578_v32, %s1966_s8  ;;  %s1990_s8 = smov 93  }
 0x2b3   : > { %v1566_v47 = vpop.f32.mrf.mxu2 }
 0x2b4   : > { %v1571_v49 = vadd.f32 %v1566_v47, %v1478_v48 }
 0x2b6   : > { %v1580_v50 = vadd.f32 %v1576_v26, %v1571_v49 }
 0x2b9   : > { %1631 = vrot.lane.b32.xlu0 %v1579_v35, %s1962_s4  ;;  %1597 = vrot.lane.b32.xlu2 %v1578_v32, %s1984_s5  ;;  %s1991_s4 = smov 95  }
 0x2ba   : > { %1592 = vrot.lane.b32.xlu1 %v1578_v32, %s1985_s6 }
 0x2c1   : > { %1639 = vrot.lane.b32.xlu0 %v1579_v35, %s1986_s7  ;;  %1607 = vrot.lane.b32.xlu2 %v1578_v32, %s1987_s9 }
 0x2c2   : > { %1602 = vrot.lane.b32.xlu1 %v1578_v32, %s1988_s10 }
 0x2c9   : > { %1648 = vrot.lane.b32.xlu0 %v1579_v35, %s1989_s18  ;;  %1627 = vrot.lane.b32.xlu2 %v1579_v35, %s1990_s8 }
 0x2ca   : > { %1635 = vrot.lane.b32.xlu1 %v1579_v35, %s1972_s19  ;;  %s1994_s19 = smov 79  }
 0x2d1   : > { %1622 = vrot.lane.b32.xlu0 %v1579_v35, %s1991_s4  ;;  %1643 = vrot.lane.b32.xlu2 %v1579_v35, %s1992_s11 }
 0x2d2   : > { %1615 = vrot.lane.b32.xlu1 %v1579_v35, %s1983_s30 }
 0x2d9   : > { %1656 = vrot.lane.b32.xlu2 %v1580_v50, %s1993_s12 }
 0x2da   : > { %1650 = vrot.lane.b32.xlu1 %v1580_v50, %s1989_s18 }
 0x2e2   : > { %1660 = vrot.lane.b32.xlu1 %v1580_v50, %s1994_s19 }
 0x30b   : > { %v1588_v51 = vpop.permute.xlu2 %1587 }
 0x313   : > { %v1598_v52 = vpop.permute.xlu2 %1597 }
 0x31b   : > { %v1608_v39 = vpop.permute.xlu2 %1607 }
 0x323   : > { %v1614_v53 = vpop.permute.xlu0 %1613  ;;  %v1628_v54 = vpop.permute.xlu2 %1627 }
 0x324   : > { %1630 = vst.msk [vmem:[%s2432_s25 + $0x8] sm:$0xff] %vm1585_vm2, %v1628_v54  ;;  %v1583_v55 = vpop.permute.xlu1 %1582 }
 0x325   : > { %1586 = vst.msk [vmem:[%s2432_s25] sm:$0xff] %vm1585_vm2, %v1583_v55 }
 0x326   : > { %1591 = vst.msk [vmem:[%s2432_s25] sm:$0xff] %vm1590_vm3, %v1588_v51 }
 0x32b   : > { %v1632_v56 = vpop.permute.xlu0 %1631  ;;  %v1644_v1 = vpop.permute.xlu2 %1643 }
 0x32c   : > { %1634 = vst.msk [vmem:[%s2432_s25 + $0x8] sm:$0xff] %vm1590_vm3, %v1632_v56  ;;  %v1593_v57 = vpop.permute.xlu1 %1592 }
 0x32d   : > { %1596 = vst.msk [vmem:[%s2432_s25] sm:$0xff] %vm1595_vm4, %v1593_v57 }
 0x32e   : > { %1601 = vst.msk [vmem:[%s2432_s25] sm:$0xff] %vm1600_vm5, %v1598_v52 }
 0x333   : > { %v1640_v58 = vpop.permute.xlu0 %1639  ;;  %v1657_v3 = vpop.permute.xlu2 %1656 }
 0x334   : > { %v1603_v62 = vpop.permute.xlu1 %1602 }
 0x335   : > { %1606 = vst.msk [vmem:[%s2432_s25] sm:$0xff] %vm1605_vm6, %v1603_v62 }
 0x336   : > { %1611 = vst.msk [vmem:[%s2432_s25] sm:$0xff] %vm1610_vm7, %v1608_v39 }
 0x33b   : > { %v1649_v63 = vpop.permute.xlu0 %1648 }
 0x33c   : > { %v1636_v0 = vpop.permute.xlu1 %1635 }
 0x33d   : > { %1638 = vst.msk [vmem:[%s2432_s25 + $0x8] sm:$0xff] %vm1595_vm4, %v1636_v0 }
 0x33e   : > { %1642 = vst.msk [vmem:[%s2432_s25 + $0x8] sm:$0xff] %vm1600_vm5, %v1640_v58 }
 0x33f   : > { %1646 = vst.msk [vmem:[%s2432_s25 + $0x8] sm:$0xff] %vm1605_vm6, %v1644_v1 }
 0x343   : > { %v1623_v59 = vpop.permute.xlu0 %1622 }
 0x344   : > { %v1616_v41 = vpop.permute.xlu1 %1615 }
 0x345   : > { %v1618_v43 = vsel %vm1617_vm9, %v1614_v53, %v1616_v41 }
 0x346   : > { %1621 = vst.msk [vmem:[%s2432_s25] sm:$0xff] %vm1620_vm10, %v1618_v43 }
 0x347   : > { %1626 = vst.msk [vmem:[%s2432_s25] sm:$0xff] %vm1625_vm11, %v1623_v59 }
 0x34c   : > { %v1651_v61 = vpop.permute.xlu1 %1650 }
 0x34d   : > { %v1653_v2 = vsel %vm1652_vm12, %v1649_v63, %v1651_v61 }
 0x34e   : > { %1655 = vst.msk [vmem:[%s2432_s25 + $0x8] sm:$0xff] %vm1610_vm7, %v1653_v2 }
 0x34f   : > { %1659 = vst.msk [vmem:[%s2432_s25 + $0x8] sm:$0xff] %vm1620_vm10, %v1657_v3 }
 0x354   : > { %v1661_v4 = vpop.permute.xlu1 %1660 }
 0x355   : > { %1663 = vst.msk [vmem:[%s2432_s25 + $0x8] sm:$0xff] %vm1625_vm11, %v1661_v4 }
 0x356 PF: > { %p13_p7 = scmp.ge.s32.totalorder %s2037_s17, 4   ;;  %s2472_s12 = smov %s1944_s13 }
 0x357   : > { %s2473_s13 = smov %s1948_s14  ;;  %s2474_s14 = smov %s2047_s20 }
 0x358   : > { %s2475_s15 = smov %s2037_s17  ;;  %15 = sbr.rel (!%p13_p7) target bundleno = 3 (0x3), region = 89 }
 0x35d   :  { %1685 = vsyncpa [#allocation5], 1 }
 0x35e   :  { %1687 = vsyncpa [#allocation5 + $0x1], 1 }

</bundles_post_ra>
